<compile_context>
chip_gen: v5e
topology: v5e:2x2
jax: 0.10.0
libtpu: 0.0.40
codegen_flags: <defaults>
</compile_context>

<pallas_src>
import functools

import jax
import jax.numpy as jnp
import numpy as np
from jax.experimental import pallas as pl
from jax.experimental.pallas import tpu as pltpu


# ----------------------------------------------------------------------------
# Static helpers
# ----------------------------------------------------------------------------
def _make_knots(grid_size, spline_order, grid_range):
    h = (grid_range[1] - grid_range[0]) / grid_size
    return [float(grid_range[0] + (i - spline_order) * h)
            for i in range(grid_size + 2 * spline_order + 1)]


def _make_tap_mask(H, W):
    """(9, H*W) f32 validity mask for the 3x3 taps with zero padding."""
    ys, xs = np.divmod(np.arange(H * W), W)
    rows = []
    for dy in (-1, 0, 1):
        for dx in (-1, 0, 1):
            valid = ((ys + dy >= 0) & (ys + dy < H) &
                     (xs + dx >= 0) & (xs + dx < W))
            rows.append(valid.astype(np.float32))
    return jnp.asarray(np.stack(rows, axis=0))


def _choose_pairs_per_group(n_pairs, P, cin, cout, size):
    """Pairs per grid step: big enough to amortize per-step overhead, small
    enough to keep VMEM modest and keep >= 2 grid steps (both v7x TCs busy)."""
    if n_pairs <= 1:
        return 1
    cpack = 2 * cin
    # rough per-pair VMEM bytes (double-buffered x/out + patches + w scratch)
    per_pair = 4 * P * (2 * cpack + 2 * 2 * cout + 9 * cpack + 2 * size) * 2
    g_vmem = max(1, (8 << 20) // per_pair)
    # target ~512 KiB of streamed x per step
    g_stream = max(1, (512 << 10) // (4 * cpack * P))
    g_cap = max(1, min(g_vmem, g_stream, n_pairs // 2))
    best = 1
    for g in range(1, g_cap + 1):
        if n_pairs % g == 0:
            best = g
    return best


# ----------------------------------------------------------------------------
# Pallas kernel (G image pairs per grid step; packed channels in sublanes,
# pixels in lanes)
# ----------------------------------------------------------------------------
def _make_kan_kernel(knots, spline_order, cin, cout, n_bases, H, W, g_pairs):
    P = H * W
    L = g_pairs * P
    cpack = 2 * cin                       # packed channels (two images / pair)
    t = [float(v) for v in knots]
    nb0 = len(t) - 1

    def kernel(mask_ref, x_ref, encw_ref, encb_ref, basew_ref, pww_ref,
               pwb_ref, o_ref, patches_ref, w_ref):
        # --- in-kernel "im2col": per pair, 9 rolled + boundary-masked copies --
        # Built per image pair so the flat lane roll never wraps across images.
        mrows = [mask_ref[tp:tp + 1, :] for tp in range(9)]      # (1, P) each
        for g in range(g_pairs):
            xg = x_ref[g]                                        # (cpack, P)
            for tap in range(9):
                dy = tap // 3 - 1
                dx = tap % 3 - 1
                off = dy * W + dx                                # flat offset
                if off == 0:
                    xs = xg                                      # mask == 1
                else:
                    xs = pltpu.roll(xg, (-off) % P, 1) * mrows[tap]
                # full-sublane 8-row store into the packed-tap scratch layout
                patches_ref[tap * cpack:(tap + 1) * cpack,
                            g * P:(g + 1) * P] = xs

        # --- encoder: one MXU matmul over all pairs in this step --------------
        # (2*size, 9*cpack) @ (9*cpack, L); result spilled to VMEM scratch.
        w_ref[...] = (jnp.dot(encw_ref[...], patches_ref[...],
                              preferred_element_type=jnp.float32)
                      + encb_ref[...])

        # lane-stacked packed activations = rows of the identity tap (dy=dx=0)
        x = patches_ref[4 * cpack:5 * cpack, :]                  # (cpack, L)

        # --- order-0 B-spline bases (only two step arrays live at a time) -----
        prev = (x >= t[0]).astype(jnp.float32)
        bases = []
        for j in range(nb0):
            cur = (x >= t[j + 1]).astype(jnp.float32)
            bases.append(prev - cur)
            prev = cur

        # --- Cox–de Boor recursion with compile-time reciprocal constants -----
        for order in range(1, spline_order + 1):
            nxt = []
            for j in range(nb0 - order):
                inv_l = 1.0 / (t[j + order] - t[j])
                inv_r = 1.0 / (t[j + order + 1] - t[j + 1])
                nxt.append((x - t[j]) * inv_l * bases[j]
                           + (t[j + order + 1] - x) * inv_r * bases[j + 1])
            bases = nxt
        # bases: n_bases arrays of shape (cpack, L)

        # --- weighted basis reduction (w row-slices re-read from VMEM) --------
        spline = jnp.zeros_like(x)
        for j in range(n_bases):
            spline = spline + w_ref[j * cpack:(j + 1) * cpack, :] * bases[j]

        # --- residual branch: base_w * silu(x)  (EUP exp + approx recip) ------
        sig = pl.reciprocal(1.0 + jnp.exp(-x), approx=True)
        y = spline + basew_ref[...] * (x * sig)                  # (cpack, L)

        # --- pointwise Cin -> Cout mix per packed image half (VPU FMAs) -------
        mix = pww_ref[...]                                       # (cout, cin)
        pwb = pwb_ref[...]                                       # (cout, 1)
        outs = []
        for img in range(2):
            o = pwb + mix[:, 0:1] * y[img * cin:img * cin + 1, :]
            for c in range(1, cin):
                o = o + mix[:, c:c + 1] * y[img * cin + c:img * cin + c + 1, :]
            outs.append(o)                                       # (cout, L)

        # --- store: lane-slice back to the per-pair packed layout -------------
        for g in range(g_pairs):
            o_ref[g, 0:cout, :] = (
                outs[0][:, g * P:(g + 1) * P].astype(o_ref.dtype))
            o_ref[g, cout:2 * cout, :] = (
                outs[1][:, g * P:(g + 1) * P].astype(o_ref.dtype))

    return kernel


# ----------------------------------------------------------------------------
# Wrapper (forward pass of ConvSepKanLayer)
# ----------------------------------------------------------------------------
def conv_sep_kan_layer(x_nchw, params, *, grid_size, spline_order, grid_range,
                       pairs_per_group=None):
    N, Cin, H, W = x_nchw.shape
    Cout = params["pw_w"].shape[1]
    n_bases = grid_size + spline_order
    size = Cin * n_bases
    P = H * W
    cpack = 2 * Cin
    knots = _make_knots(grid_size, spline_order, grid_range)

    # Pad batch to an even count so two images pack into the sublane axis.
    N_pad = N + (N % 2)
    if N_pad != N:
        x_nchw = jnp.concatenate(
            [x_nchw, jnp.zeros((1, Cin, H, W), x_nchw.dtype)], axis=0)
    n_pairs = N_pad // 2

    if pairs_per_group is None:
        pairs_per_group = _choose_pairs_per_group(n_pairs, P, Cin, Cout, size)
    G = pairs_per_group
    assert n_pairs % G == 0, "pairs_per_group must divide the number of pairs"
    n_groups = n_pairs // G

    # NCHW is channel-major: free reshapes give the packed (pair, 2*Cin, P).
    x3 = x_nchw.reshape(n_pairs, cpack, P)
    mask = _make_tap_mask(H, W)                           # (9, P)

    # --- pack weights for the sublane-paired layout --------------------------
    enc_wT = jnp.transpose(params["enc_w"])               # (size, 9*Cin)
    ew = enc_wT.reshape(n_bases, Cin, 9, Cin)             # [j, c, tap, c']
    eye2 = jnp.eye(2, dtype=enc_wT.dtype)
    enc_bd = (ew[:, None, :, :, None, :]
              * eye2[None, :, None, None, :, None]).reshape(2 * size, 9 * cpack)
    enc_b = jnp.tile(params["enc_b"].reshape(n_bases, 1, Cin),
                     (1, 2, 1)).reshape(2 * size, 1)
    base_w = jnp.tile(params["base_w"].reshape(1, Cin), (2, 1)).reshape(cpack, 1)
    pw_wT = jnp.transpose(params["pw_w"])                 # (Cout, Cin)
    pw_b = params["pw_b"].reshape(Cout, 1)

    kernel = _make_kan_kernel(knots, spline_order, Cin, Cout, n_bases, H, W, G)

    L = G * P
    flops = int(n_groups * (2 * (2 * size) * (9 * cpack) * L   # encoder matmul
                            + 260 * cpack * L                  # spline/silu VPU
                            + 4 * Cout * Cin * L))             # pointwise mix
    cost = pl.CostEstimate(
        flops=flops,
        transcendentals=int(n_groups * cpack * L),
        bytes_accessed=int(4 * (n_pairs * cpack * P + n_pairs * 2 * Cout * P
                                + 9 * P + 2 * size * 9 * cpack + 2 * size
                                + cpack + Cout * Cin + Cout)),
    )

    out3 = pl.pallas_call(
        kernel,
        out_shape=jax.ShapeDtypeStruct((n_pairs, 2 * Cout, P), jnp.float32),
        grid=(n_groups,),
        in_specs=[
            pl.BlockSpec((9, P), lambda i: (0, 0)),                 # tap masks
            pl.BlockSpec((G, cpack, P), lambda i: (i, 0, 0)),       # packed x
            pl.BlockSpec((2 * size, 9 * cpack), lambda i: (0, 0)),  # encoder W
            pl.BlockSpec((2 * size, 1), lambda i: (0, 0)),          # encoder b
            pl.BlockSpec((cpack, 1), lambda i: (0, 0)),             # base w
            pl.BlockSpec((Cout, Cin), lambda i: (0, 0)),            # pointwise W
            pl.BlockSpec((Cout, 1), lambda i: (0, 0)),              # pointwise b
        ],
        out_specs=pl.BlockSpec((G, 2 * Cout, P), lambda i: (i, 0, 0)),
        scratch_shapes=[pltpu.VMEM((9 * cpack, L), jnp.float32),    # patches
                        pltpu.VMEM((2 * size, L), jnp.float32)],    # enc output
        compiler_params=pltpu.CompilerParams(
            dimension_semantics=("parallel",),
            vmem_limit_bytes=32 * 1024 * 1024),
        cost_estimate=cost,
    )(mask, x3, enc_bd, enc_b, base_w, pw_wT, pw_b)

    out = out3.reshape(N_pad, Cout, H, W)                 # free reshapes, NCHW
    return out[:N]


# ----------------------------------------------------------------------------
# Pure-JAX reference (same math, no Pallas) for validation
# ----------------------------------------------------------------------------
def _im2col_3x3(x_nhwc):
    N, H, W, C = x_nhwc.shape
    xp = jnp.pad(x_nhwc, ((0, 0), (1, 1), (1, 1), (0, 0)))
    pieces = [xp[:, dy:dy + H, dx:dx + W, :] for dy in range(3) for dx in range(3)]
    return jnp.concatenate(pieces, axis=-1)  # (N, H, W, 9*C)


def conv_sep_kan_reference(x_nchw, params, *, grid_size, spline_order, grid_range):
    N, Cin, H, W = x_nchw.shape
    Cout = params["pw_w"].shape[1]
    n_bases = grid_size + spline_order
    knots = _make_knots(grid_size, spline_order, grid_range)

    x_nhwc = jnp.transpose(x_nchw, (0, 2, 3, 1))
    patches = _im2col_3x3(x_nhwc).reshape(N * H * W, 9 * Cin)
    x = x_nhwc.reshape(N * H * W, Cin)

    w = (jnp.dot(patches, params["enc_w"],
                 precision=jax.lax.Precision.HIGHEST)
         + params["enc_b"][None, :])

    t = knots
    nb0 = len(t) - 1
    bases = [jnp.where((x >= t[j]) & (x < t[j + 1]), 1.0, 0.0).astype(jnp.float32)
             for j in range(nb0)]
    for p in range(1, spline_order + 1):
        bases = [
            (x - t[j]) / (t[j + p] - t[j]) * bases[j]
            + (t[j + p + 1] - x) / (t[j + p + 1] - t[j + 1]) * bases[j + 1]
            for j in range(nb0 - p)
        ]

    spline = jnp.zeros_like(x)
    for j in range(n_bases):
        spline = spline + w[:, j * Cin:(j + 1) * Cin] * bases[j]

    y = spline + params["base_w"][None, :] * (x * jax.nn.sigmoid(x))
    out = (jnp.dot(y, params["pw_w"], precision=jax.lax.Precision.HIGHEST)
           + params["pw_b"][None, :])
    return jnp.transpose(out.reshape(N, H, W, Cout), (0, 3, 1, 2))


# ----------------------------------------------------------------------------
# Main
# ----------------------------------------------------------------------------
if __name__ == "__main__":
    # Module hyper-params
    in_channels, out_channels = 4, 8
    grid_size, spline_order = 5, 3
    residual_std = 0.1
    grid_range = (-1.0, 1.0)
    n_bases = grid_size + spline_order
    size = in_channels * n_bases                 # kan_cell.size == 32

    # Small example shapes; N=4 -> 2 packed pairs -> grid=(2,) (even, v7x-friendly)
    N, H, W = 4, 16, 16

    key = jax.random.PRNGKey(0)
    kx, k1, k2, k3, k4, k5 = jax.random.split(key, 6)

    x = jax.random.normal(kx, (N, in_channels, H, W), dtype=jnp.float32)

    params = {
        # encoder conv (3x3, pad=1) expressed as an im2col matmul weight
        "enc_w": 0.1 * jax.random.normal(k1, (9 * in_channels, size), jnp.float32),
        "enc_b": 0.01 * jax.random.normal(k2, (size,), jnp.float32),
        # residual (base) weights, init ~ N(0, residual_std)
        "base_w": residual_std * jax.random.normal(k3, (in_channels,), jnp.float32),
        # pointwise 1x1 channel mixing
        "pw_w": (1.0 / np.sqrt(in_channels))
                * jax.random.normal(k4, (in_channels, out_channels), jnp.float32),
        "pw_b": 0.01 * jax.random.normal(k5, (out_channels,), jnp.float32),
    }

    run = functools.partial(conv_sep_kan_layer,
                            grid_size=grid_size,
                            spline_order=spline_order,
                            grid_range=grid_range)

    out = jax.block_until_ready(run(x, params))
    assert out.shape == (N, out_channels, H, W)

    ref = conv_sep_kan_reference(x, params,
                                 grid_size=grid_size,
                                 spline_order=spline_order,
                                 grid_range=grid_range)
    np.testing.assert_allclose(np.asarray(out), np.asarray(ref),
                               rtol=1e-2, atol=1e-2)

    print("KERNEL_OK")
</pallas_src>

<mosaic_0001>
module attributes {stable_mosaic.version = 11 : i64} {
  func.func @kernel(%arg0: i32, %arg1: memref<9x256xf32, #tpu.memory_space<vmem>>, %arg2: memref<1x8x256xf32, #tpu.memory_space<vmem>>, %arg3: memref<64x72xf32, #tpu.memory_space<vmem>>, %arg4: memref<64x1xf32, #tpu.memory_space<vmem>>, %arg5: memref<8x1xf32, #tpu.memory_space<vmem>>, %arg6: memref<8x4xf32, #tpu.memory_space<vmem>>, %arg7: memref<8x1xf32, #tpu.memory_space<vmem>>, %arg8: memref<1x16x256xf32, #tpu.memory_space<vmem>>, %arg9: memref<72x256xf32, #tpu.memory_space<vmem>>, %arg10: memref<64x256xf32, #tpu.memory_space<vmem>>) attributes {dimension_semantics = [#tpu.dimension_semantics<parallel>], iteration_bounds = array<i64: 2>, scalar_prefetch = 0 : i64, scratch_operands = 2 : i64, tpu.core_type = #tpu.core_type<tc>, window_params = [{pipeline_mode = #tpu.pipeline_mode<synchronous>, transform_indices = @transform_0, window_bounds = array<i64: 9, 256>}, {transform_indices = @transform_1, window_bounds = array<i64: 1, 8, 256>}, {pipeline_mode = #tpu.pipeline_mode<synchronous>, transform_indices = @transform_2, window_bounds = array<i64: 64, 72>}, {pipeline_mode = #tpu.pipeline_mode<synchronous>, transform_indices = @transform_3, window_bounds = array<i64: 64, 1>}, {pipeline_mode = #tpu.pipeline_mode<synchronous>, transform_indices = @transform_4, window_bounds = array<i64: 8, 1>}, {pipeline_mode = #tpu.pipeline_mode<synchronous>, transform_indices = @transform_5, window_bounds = array<i64: 8, 4>}, {pipeline_mode = #tpu.pipeline_mode<synchronous>, transform_indices = @transform_6, window_bounds = array<i64: 8, 1>}, {transform_indices = @transform_7, window_bounds = array<i64: 1, 16, 256>}]} {
    %c0 = arith.constant 0 : index
    %c0_0 = arith.constant 0 : index
    %0 = vector.load %arg1[%c0, %c0_0] : memref<9x256xf32, #tpu.memory_space<vmem>>, vector<1x256xf32>
    %c1 = arith.constant 1 : index
    %c0_1 = arith.constant 0 : index
    %1 = vector.load %arg1[%c1, %c0_1] : memref<9x256xf32, #tpu.memory_space<vmem>>, vector<1x256xf32>
    %c2 = arith.constant 2 : index
    %c0_2 = arith.constant 0 : index
    %2 = vector.load %arg1[%c2, %c0_2] : memref<9x256xf32, #tpu.memory_space<vmem>>, vector<1x256xf32>
    %c3 = arith.constant 3 : index
    %c0_3 = arith.constant 0 : index
    %3 = vector.load %arg1[%c3, %c0_3] : memref<9x256xf32, #tpu.memory_space<vmem>>, vector<1x256xf32>
    %c5 = arith.constant 5 : index
    %c0_4 = arith.constant 0 : index
    %4 = vector.load %arg1[%c5, %c0_4] : memref<9x256xf32, #tpu.memory_space<vmem>>, vector<1x256xf32>
    %c6 = arith.constant 6 : index
    %c0_5 = arith.constant 0 : index
    %5 = vector.load %arg1[%c6, %c0_5] : memref<9x256xf32, #tpu.memory_space<vmem>>, vector<1x256xf32>
    %c7 = arith.constant 7 : index
    %c0_6 = arith.constant 0 : index
    %6 = vector.load %arg1[%c7, %c0_6] : memref<9x256xf32, #tpu.memory_space<vmem>>, vector<1x256xf32>
    %c8 = arith.constant 8 : index
    %c0_7 = arith.constant 0 : index
    %7 = vector.load %arg1[%c8, %c0_7] : memref<9x256xf32, #tpu.memory_space<vmem>>, vector<1x256xf32>
    %c0_8 = arith.constant 0 : index
    %c0_9 = arith.constant 0 : index
    %c0_10 = arith.constant 0 : index
    %8 = vector.load %arg2[%c0_8, %c0_9, %c0_10] : memref<1x8x256xf32, #tpu.memory_space<vmem>>, vector<1x8x256xf32>
    %9 = vector.shape_cast %8 : vector<1x8x256xf32> to vector<8x256xf32>
    %c17_i32 = arith.constant 17 : i32
    %10 = tpu.dynamic_rotate %9 by %c17_i32 dim 1 : vector<8x256xf32>, i32 -> vector<8x256xf32>
    %11 = vector.broadcast %0 : vector<1x256xf32> to vector<8x256xf32>
    %12 = arith.mulf %10, %11 : vector<8x256xf32>
    %c0_11 = arith.constant 0 : index
    %c0_12 = arith.constant 0 : index
    %13 = vector.load %arg9[%c0_11, %c0_12] : memref<72x256xf32, #tpu.memory_space<vmem>>, vector<8x256xf32>
    tpu.vector_store %arg9[%c0_11, %c0_12], %12 {strides = array<i32>} : memref<72x256xf32, #tpu.memory_space<vmem>>, vector<8x256xf32>,
    %c16_i32 = arith.constant 16 : i32
    %14 = tpu.dynamic_rotate %9 by %c16_i32 dim 1 : vector<8x256xf32>, i32 -> vector<8x256xf32>
    %15 = vector.broadcast %1 : vector<1x256xf32> to vector<8x256xf32>
    %16 = arith.mulf %14, %15 : vector<8x256xf32>
    %c8_13 = arith.constant 8 : index
    %c0_14 = arith.constant 0 : index
    %17 = vector.load %arg9[%c8_13, %c0_14] : memref<72x256xf32, #tpu.memory_space<vmem>>, vector<8x256xf32>
    tpu.vector_store %arg9[%c8_13, %c0_14], %16 {strides = array<i32>} : memref<72x256xf32, #tpu.memory_space<vmem>>, vector<8x256xf32>,
    %c15_i32 = arith.constant 15 : i32
    %18 = tpu.dynamic_rotate %9 by %c15_i32 dim 1 : vector<8x256xf32>, i32 -> vector<8x256xf32>
    %19 = vector.broadcast %2 : vector<1x256xf32> to vector<8x256xf32>
    %20 = arith.mulf %18, %19 : vector<8x256xf32>
    %c16 = arith.constant 16 : index
    %c0_15 = arith.constant 0 : index
    %21 = vector.load %arg9[%c16, %c0_15] : memref<72x256xf32, #tpu.memory_space<vmem>>, vector<8x256xf32>
    tpu.vector_store %arg9[%c16, %c0_15], %20 {strides = array<i32>} : memref<72x256xf32, #tpu.memory_space<vmem>>, vector<8x256xf32>,
    %c1_i32 = arith.constant 1 : i32
    %22 = tpu.dynamic_rotate %9 by %c1_i32 dim 1 : vector<8x256xf32>, i32 -> vector<8x256xf32>
    %23 = vector.broadcast %3 : vector<1x256xf32> to vector<8x256xf32>
    %24 = arith.mulf %22, %23 : vector<8x256xf32>
    %c24 = arith.constant 24 : index
    %c0_16 = arith.constant 0 : index
    %25 = vector.load %arg9[%c24, %c0_16] : memref<72x256xf32, #tpu.memory_space<vmem>>, vector<8x256xf32>
    tpu.vector_store %arg9[%c24, %c0_16], %24 {strides = array<i32>} : memref<72x256xf32, #tpu.memory_space<vmem>>, vector<8x256xf32>,
    %c32 = arith.constant 32 : index
    %c0_17 = arith.constant 0 : index
    %26 = vector.load %arg9[%c32, %c0_17] : memref<72x256xf32, #tpu.memory_space<vmem>>, vector<8x256xf32>
    tpu.vector_store %arg9[%c32, %c0_17], %9 {strides = array<i32>} : memref<72x256xf32, #tpu.memory_space<vmem>>, vector<8x256xf32>,
    %c255_i32 = arith.constant 255 : i32
    %27 = tpu.dynamic_rotate %9 by %c255_i32 dim 1 : vector<8x256xf32>, i32 -> vector<8x256xf32>
    %28 = vector.broadcast %4 : vector<1x256xf32> to vector<8x256xf32>
    %29 = arith.mulf %27, %28 : vector<8x256xf32>
    %c40 = arith.constant 40 : index
    %c0_18 = arith.constant 0 : index
    %30 = vector.load %arg9[%c40, %c0_18] : memref<72x256xf32, #tpu.memory_space<vmem>>, vector<8x256xf32>
    tpu.vector_store %arg9[%c40, %c0_18], %29 {strides = array<i32>} : memref<72x256xf32, #tpu.memory_space<vmem>>, vector<8x256xf32>,
    %c241_i32 = arith.constant 241 : i32
    %31 = tpu.dynamic_rotate %9 by %c241_i32 dim 1 : vector<8x256xf32>, i32 -> vector<8x256xf32>
    %32 = vector.broadcast %5 : vector<1x256xf32> to vector<8x256xf32>
    %33 = arith.mulf %31, %32 : vector<8x256xf32>
    %c48 = arith.constant 48 : index
    %c0_19 = arith.constant 0 : index
    %34 = vector.load %arg9[%c48, %c0_19] : memref<72x256xf32, #tpu.memory_space<vmem>>, vector<8x256xf32>
    tpu.vector_store %arg9[%c48, %c0_19], %33 {strides = array<i32>} : memref<72x256xf32, #tpu.memory_space<vmem>>, vector<8x256xf32>,
    %c240_i32 = arith.constant 240 : i32
    %35 = tpu.dynamic_rotate %9 by %c240_i32 dim 1 : vector<8x256xf32>, i32 -> vector<8x256xf32>
    %36 = vector.broadcast %6 : vector<1x256xf32> to vector<8x256xf32>
    %37 = arith.mulf %35, %36 : vector<8x256xf32>
    %c56 = arith.constant 56 : index
    %c0_20 = arith.constant 0 : index
    %38 = vector.load %arg9[%c56, %c0_20] : memref<72x256xf32, #tpu.memory_space<vmem>>, vector<8x256xf32>
    tpu.vector_store %arg9[%c56, %c0_20], %37 {strides = array<i32>} : memref<72x256xf32, #tpu.memory_space<vmem>>, vector<8x256xf32>,
    %c239_i32 = arith.constant 239 : i32
    %39 = tpu.dynamic_rotate %9 by %c239_i32 dim 1 : vector<8x256xf32>, i32 -> vector<8x256xf32>
    %40 = vector.broadcast %7 : vector<1x256xf32> to vector<8x256xf32>
    %41 = arith.mulf %39, %40 : vector<8x256xf32>
    %c64 = arith.constant 64 : index
    %c0_21 = arith.constant 0 : index
    %42 = vector.load %arg9[%c64, %c0_21] : memref<72x256xf32, #tpu.memory_space<vmem>>, vector<8x256xf32>
    tpu.vector_store %arg9[%c64, %c0_21], %41 {strides = array<i32>} : memref<72x256xf32, #tpu.memory_space<vmem>>, vector<8x256xf32>,
    %c0_22 = arith.constant 0 : index
    %c0_23 = arith.constant 0 : index
    %43 = vector.load %arg3[%c0_22, %c0_23] : memref<64x72xf32, #tpu.memory_space<vmem>>, vector<64x72xf32>
    %c0_24 = arith.constant 0 : index
    %c0_25 = arith.constant 0 : index
    %44 = vector.load %arg9[%c0_24, %c0_25] : memref<72x256xf32, #tpu.memory_space<vmem>>, vector<72x256xf32>
    %cst = arith.constant dense<0.000000e+00> : vector<64x256xf32>
    %45 = tpu.matmul %43, %44, %cst {dimension_numbers = #tpu.dot_dimension_numbers<[1], [0], [0], [1], [0, 0, 1, 1], [], []>} : vector<64x72xf32>, vector<72x256xf32>, vector<64x256xf32> -> vector<64x256xf32>
    %c0_26 = arith.constant 0 : index
    %c0_27 = arith.constant 0 : index
    %46 = vector.load %arg4[%c0_26, %c0_27] : memref<64x1xf32, #tpu.memory_space<vmem>>, vector<64x1xf32>
    %47 = vector.broadcast %46 : vector<64x1xf32> to vector<64x256xf32>
    %48 = arith.addf %45, %47 : vector<64x256xf32>
    %c0_28 = arith.constant 0 : index
    %c0_29 = arith.constant 0 : index
    %49 = vector.load %arg10[%c0_28, %c0_29] : memref<64x256xf32, #tpu.memory_space<vmem>>, vector<64x256xf32>
    tpu.vector_store %arg10[%c0_28, %c0_29], %48 {strides = array<i32>} : memref<64x256xf32, #tpu.memory_space<vmem>>, vector<64x256xf32>,
    %c32_30 = arith.constant 32 : index
    %c0_31 = arith.constant 0 : index
    %50 = vector.load %arg9[%c32_30, %c0_31] : memref<72x256xf32, #tpu.memory_space<vmem>>, vector<8x256xf32>
    %cst_32 = arith.constant -2.200000e+00 : f32
    %51 = vector.broadcast %cst_32 : f32 to vector<8x256xf32>
    %52 = arith.cmpf oge, %50, %51 : vector<8x256xf32>
    %53 = arith.extui %52 : vector<8x256xi1> to vector<8x256xi32>
    %54 = arith.sitofp %53 : vector<8x256xi32> to vector<8x256xf32>
    %cst_33 = arith.constant -1.800000e+00 : f32
    %55 = vector.broadcast %cst_33 : f32 to vector<8x256xf32>
    %56 = arith.cmpf oge, %50, %55 : vector<8x256xf32>
    %57 = arith.extui %56 : vector<8x256xi1> to vector<8x256xi32>
    %58 = arith.sitofp %57 : vector<8x256xi32> to vector<8x256xf32>
    %59 = arith.subf %54, %58 : vector<8x256xf32>
    %cst_34 = arith.constant -1.400000e+00 : f32
    %60 = vector.broadcast %cst_34 : f32 to vector<8x256xf32>
    %61 = arith.cmpf oge, %50, %60 : vector<8x256xf32>
    %62 = arith.extui %61 : vector<8x256xi1> to vector<8x256xi32>
    %63 = arith.sitofp %62 : vector<8x256xi32> to vector<8x256xf32>
    %64 = arith.subf %58, %63 : vector<8x256xf32>
    %cst_35 = arith.constant -1.000000e+00 : f32
    %65 = vector.broadcast %cst_35 : f32 to vector<8x256xf32>
    %66 = arith.cmpf oge, %50, %65 : vector<8x256xf32>
    %67 = arith.extui %66 : vector<8x256xi1> to vector<8x256xi32>
    %68 = arith.sitofp %67 : vector<8x256xi32> to vector<8x256xf32>
    %69 = arith.subf %63, %68 : vector<8x256xf32>
    %cst_36 = arith.constant -6.000000e-01 : f32
    %70 = vector.broadcast %cst_36 : f32 to vector<8x256xf32>
    %71 = arith.cmpf oge, %50, %70 : vector<8x256xf32>
    %72 = arith.extui %71 : vector<8x256xi1> to vector<8x256xi32>
    %73 = arith.sitofp %72 : vector<8x256xi32> to vector<8x256xf32>
    %74 = arith.subf %68, %73 : vector<8x256xf32>
    %cst_37 = arith.constant -2.000000e-01 : f32
    %75 = vector.broadcast %cst_37 : f32 to vector<8x256xf32>
    %76 = arith.cmpf oge, %50, %75 : vector<8x256xf32>
    %77 = arith.extui %76 : vector<8x256xi1> to vector<8x256xi32>
    %78 = arith.sitofp %77 : vector<8x256xi32> to vector<8x256xf32>
    %79 = arith.subf %73, %78 : vector<8x256xf32>
    %cst_38 = arith.constant 2.000000e-01 : f32
    %80 = vector.broadcast %cst_38 : f32 to vector<8x256xf32>
    %81 = arith.cmpf oge, %50, %80 : vector<8x256xf32>
    %82 = arith.extui %81 : vector<8x256xi1> to vector<8x256xi32>
    %83 = arith.sitofp %82 : vector<8x256xi32> to vector<8x256xf32>
    %84 = arith.subf %78, %83 : vector<8x256xf32>
    %cst_39 = arith.constant 6.000000e-01 : f32
    %85 = vector.broadcast %cst_39 : f32 to vector<8x256xf32>
    %86 = arith.cmpf oge, %50, %85 : vector<8x256xf32>
    %87 = arith.extui %86 : vector<8x256xi1> to vector<8x256xi32>
    %88 = arith.sitofp %87 : vector<8x256xi32> to vector<8x256xf32>
    %89 = arith.subf %83, %88 : vector<8x256xf32>
    %cst_40 = arith.constant 1.000000e+00 : f32
    %90 = vector.broadcast %cst_40 : f32 to vector<8x256xf32>
    %91 = arith.cmpf oge, %50, %90 : vector<8x256xf32>
    %92 = arith.extui %91 : vector<8x256xi1> to vector<8x256xi32>
    %93 = arith.sitofp %92 : vector<8x256xi32> to vector<8x256xf32>
    %94 = arith.subf %88, %93 : vector<8x256xf32>
    %cst_41 = arith.constant 1.400000e+00 : f32
    %95 = vector.broadcast %cst_41 : f32 to vector<8x256xf32>
    %96 = arith.cmpf oge, %50, %95 : vector<8x256xf32>
    %97 = arith.extui %96 : vector<8x256xi1> to vector<8x256xi32>
    %98 = arith.sitofp %97 : vector<8x256xi32> to vector<8x256xf32>
    %99 = arith.subf %93, %98 : vector<8x256xf32>
    %cst_42 = arith.constant 1.800000e+00 : f32
    %100 = vector.broadcast %cst_42 : f32 to vector<8x256xf32>
    %101 = arith.cmpf oge, %50, %100 : vector<8x256xf32>
    %102 = arith.extui %101 : vector<8x256xi1> to vector<8x256xi32>
    %103 = arith.sitofp %102 : vector<8x256xi32> to vector<8x256xf32>
    %104 = arith.subf %98, %103 : vector<8x256xf32>
    %cst_43 = arith.constant 2.200000e+00 : f32
    %105 = vector.broadcast %cst_43 : f32 to vector<8x256xf32>
    %106 = arith.cmpf oge, %50, %105 : vector<8x256xf32>
    %107 = arith.extui %106 : vector<8x256xi1> to vector<8x256xi32>
    %108 = arith.sitofp %107 : vector<8x256xi32> to vector<8x256xf32>
    %109 = arith.subf %103, %108 : vector<8x256xf32>
    %cst_44 = arith.constant -2.200000e+00 : f32
    %110 = vector.broadcast %cst_44 : f32 to vector<8x256xf32>
    %111 = arith.subf %50, %110 : vector<8x256xf32>
    %cst_45 = arith.constant 2.500000e+00 : f32
    %112 = vector.broadcast %cst_45 : f32 to vector<8x256xf32>
    %113 = arith.mulf %111, %112 : vector<8x256xf32>
    %114 = arith.mulf %113, %59 : vector<8x256xf32>
    %cst_46 = arith.constant -1.400000e+00 : f32
    %115 = vector.broadcast %cst_46 : f32 to vector<8x256xf32>
    %116 = arith.subf %115, %50 : vector<8x256xf32>
    %cst_47 = arith.constant 2.500000e+00 : f32
    %117 = vector.broadcast %cst_47 : f32 to vector<8x256xf32>
    %118 = arith.mulf %116, %117 : vector<8x256xf32>
    %119 = arith.mulf %118, %64 : vector<8x256xf32>
    %120 = arith.addf %114, %119 : vector<8x256xf32>
    %cst_48 = arith.constant -1.800000e+00 : f32
    %121 = vector.broadcast %cst_48 : f32 to vector<8x256xf32>
    %122 = arith.subf %50, %121 : vector<8x256xf32>
    %cst_49 = arith.constant 2.500000e+00 : f32
    %123 = vector.broadcast %cst_49 : f32 to vector<8x256xf32>
    %124 = arith.mulf %122, %123 : vector<8x256xf32>
    %125 = arith.mulf %124, %64 : vector<8x256xf32>
    %cst_50 = arith.constant -1.000000e+00 : f32
    %126 = vector.broadcast %cst_50 : f32 to vector<8x256xf32>
    %127 = arith.subf %126, %50 : vector<8x256xf32>
    %cst_51 = arith.constant 2.500000e+00 : f32
    %128 = vector.broadcast %cst_51 : f32 to vector<8x256xf32>
    %129 = arith.mulf %127, %128 : vector<8x256xf32>
    %130 = arith.mulf %129, %69 : vector<8x256xf32>
    %131 = arith.addf %125, %130 : vector<8x256xf32>
    %cst_52 = arith.constant -1.400000e+00 : f32
    %132 = vector.broadcast %cst_52 : f32 to vector<8x256xf32>
    %133 = arith.subf %50, %132 : vector<8x256xf32>
    %cst_53 = arith.constant 2.500000e+00 : f32
    %134 = vector.broadcast %cst_53 : f32 to vector<8x256xf32>
    %135 = arith.mulf %133, %134 : vector<8x256xf32>
    %136 = arith.mulf %135, %69 : vector<8x256xf32>
    %cst_54 = arith.constant -6.000000e-01 : f32
    %137 = vector.broadcast %cst_54 : f32 to vector<8x256xf32>
    %138 = arith.subf %137, %50 : vector<8x256xf32>
    %cst_55 = arith.constant 2.500000e+00 : f32
    %139 = vector.broadcast %cst_55 : f32 to vector<8x256xf32>
    %140 = arith.mulf %138, %139 : vector<8x256xf32>
    %141 = arith.mulf %140, %74 : vector<8x256xf32>
    %142 = arith.addf %136, %141 : vector<8x256xf32>
    %cst_56 = arith.constant -1.000000e+00 : f32
    %143 = vector.broadcast %cst_56 : f32 to vector<8x256xf32>
    %144 = arith.subf %50, %143 : vector<8x256xf32>
    %cst_57 = arith.constant 2.500000e+00 : f32
    %145 = vector.broadcast %cst_57 : f32 to vector<8x256xf32>
    %146 = arith.mulf %144, %145 : vector<8x256xf32>
    %147 = arith.mulf %146, %74 : vector<8x256xf32>
    %cst_58 = arith.constant -2.000000e-01 : f32
    %148 = vector.broadcast %cst_58 : f32 to vector<8x256xf32>
    %149 = arith.subf %148, %50 : vector<8x256xf32>
    %cst_59 = arith.constant 2.500000e+00 : f32
    %150 = vector.broadcast %cst_59 : f32 to vector<8x256xf32>
    %151 = arith.mulf %149, %150 : vector<8x256xf32>
    %152 = arith.mulf %151, %79 : vector<8x256xf32>
    %153 = arith.addf %147, %152 : vector<8x256xf32>
    %cst_60 = arith.constant -6.000000e-01 : f32
    %154 = vector.broadcast %cst_60 : f32 to vector<8x256xf32>
    %155 = arith.subf %50, %154 : vector<8x256xf32>
    %cst_61 = arith.constant 2.500000e+00 : f32
    %156 = vector.broadcast %cst_61 : f32 to vector<8x256xf32>
    %157 = arith.mulf %155, %156 : vector<8x256xf32>
    %158 = arith.mulf %157, %79 : vector<8x256xf32>
    %cst_62 = arith.constant 2.000000e-01 : f32
    %159 = vector.broadcast %cst_62 : f32 to vector<8x256xf32>
    %160 = arith.subf %159, %50 : vector<8x256xf32>
    %cst_63 = arith.constant 2.500000e+00 : f32
    %161 = vector.broadcast %cst_63 : f32 to vector<8x256xf32>
    %162 = arith.mulf %160, %161 : vector<8x256xf32>
    %163 = arith.mulf %162, %84 : vector<8x256xf32>
    %164 = arith.addf %158, %163 : vector<8x256xf32>
    %cst_64 = arith.constant -2.000000e-01 : f32
    %165 = vector.broadcast %cst_64 : f32 to vector<8x256xf32>
    %166 = arith.subf %50, %165 : vector<8x256xf32>
    %cst_65 = arith.constant 2.500000e+00 : f32
    %167 = vector.broadcast %cst_65 : f32 to vector<8x256xf32>
    %168 = arith.mulf %166, %167 : vector<8x256xf32>
    %169 = arith.mulf %168, %84 : vector<8x256xf32>
    %cst_66 = arith.constant 6.000000e-01 : f32
    %170 = vector.broadcast %cst_66 : f32 to vector<8x256xf32>
    %171 = arith.subf %170, %50 : vector<8x256xf32>
    %cst_67 = arith.constant 2.500000e+00 : f32
    %172 = vector.broadcast %cst_67 : f32 to vector<8x256xf32>
    %173 = arith.mulf %171, %172 : vector<8x256xf32>
    %174 = arith.mulf %173, %89 : vector<8x256xf32>
    %175 = arith.addf %169, %174 : vector<8x256xf32>
    %cst_68 = arith.constant 2.000000e-01 : f32
    %176 = vector.broadcast %cst_68 : f32 to vector<8x256xf32>
    %177 = arith.subf %50, %176 : vector<8x256xf32>
    %cst_69 = arith.constant 2.500000e+00 : f32
    %178 = vector.broadcast %cst_69 : f32 to vector<8x256xf32>
    %179 = arith.mulf %177, %178 : vector<8x256xf32>
    %180 = arith.mulf %179, %89 : vector<8x256xf32>
    %cst_70 = arith.constant 1.000000e+00 : f32
    %181 = vector.broadcast %cst_70 : f32 to vector<8x256xf32>
    %182 = arith.subf %181, %50 : vector<8x256xf32>
    %cst_71 = arith.constant 2.500000e+00 : f32
    %183 = vector.broadcast %cst_71 : f32 to vector<8x256xf32>
    %184 = arith.mulf %182, %183 : vector<8x256xf32>
    %185 = arith.mulf %184, %94 : vector<8x256xf32>
    %186 = arith.addf %180, %185 : vector<8x256xf32>
    %cst_72 = arith.constant 6.000000e-01 : f32
    %187 = vector.broadcast %cst_72 : f32 to vector<8x256xf32>
    %188 = arith.subf %50, %187 : vector<8x256xf32>
    %cst_73 = arith.constant 2.500000e+00 : f32
    %189 = vector.broadcast %cst_73 : f32 to vector<8x256xf32>
    %190 = arith.mulf %188, %189 : vector<8x256xf32>
    %191 = arith.mulf %190, %94 : vector<8x256xf32>
    %cst_74 = arith.constant 1.400000e+00 : f32
    %192 = vector.broadcast %cst_74 : f32 to vector<8x256xf32>
    %193 = arith.subf %192, %50 : vector<8x256xf32>
    %cst_75 = arith.constant 2.500000e+00 : f32
    %194 = vector.broadcast %cst_75 : f32 to vector<8x256xf32>
    %195 = arith.mulf %193, %194 : vector<8x256xf32>
    %196 = arith.mulf %195, %99 : vector<8x256xf32>
    %197 = arith.addf %191, %196 : vector<8x256xf32>
    %cst_76 = arith.constant 1.000000e+00 : f32
    %198 = vector.broadcast %cst_76 : f32 to vector<8x256xf32>
    %199 = arith.subf %50, %198 : vector<8x256xf32>
    %cst_77 = arith.constant 2.500000e+00 : f32
    %200 = vector.broadcast %cst_77 : f32 to vector<8x256xf32>
    %201 = arith.mulf %199, %200 : vector<8x256xf32>
    %202 = arith.mulf %201, %99 : vector<8x256xf32>
    %cst_78 = arith.constant 1.800000e+00 : f32
    %203 = vector.broadcast %cst_78 : f32 to vector<8x256xf32>
    %204 = arith.subf %203, %50 : vector<8x256xf32>
    %cst_79 = arith.constant 2.500000e+00 : f32
    %205 = vector.broadcast %cst_79 : f32 to vector<8x256xf32>
    %206 = arith.mulf %204, %205 : vector<8x256xf32>
    %207 = arith.mulf %206, %104 : vector<8x256xf32>
    %208 = arith.addf %202, %207 : vector<8x256xf32>
    %cst_80 = arith.constant 1.400000e+00 : f32
    %209 = vector.broadcast %cst_80 : f32 to vector<8x256xf32>
    %210 = arith.subf %50, %209 : vector<8x256xf32>
    %cst_81 = arith.constant 2.500000e+00 : f32
    %211 = vector.broadcast %cst_81 : f32 to vector<8x256xf32>
    %212 = arith.mulf %210, %211 : vector<8x256xf32>
    %213 = arith.mulf %212, %104 : vector<8x256xf32>
    %cst_82 = arith.constant 2.200000e+00 : f32
    %214 = vector.broadcast %cst_82 : f32 to vector<8x256xf32>
    %215 = arith.subf %214, %50 : vector<8x256xf32>
    %cst_83 = arith.constant 2.500000e+00 : f32
    %216 = vector.broadcast %cst_83 : f32 to vector<8x256xf32>
    %217 = arith.mulf %215, %216 : vector<8x256xf32>
    %218 = arith.mulf %217, %109 : vector<8x256xf32>
    %219 = arith.addf %213, %218 : vector<8x256xf32>
    %cst_84 = arith.constant -2.200000e+00 : f32
    %220 = vector.broadcast %cst_84 : f32 to vector<8x256xf32>
    %221 = arith.subf %50, %220 : vector<8x256xf32>
    %cst_85 = arith.constant 1.250000e+00 : f32
    %222 = vector.broadcast %cst_85 : f32 to vector<8x256xf32>
    %223 = arith.mulf %221, %222 : vector<8x256xf32>
    %224 = arith.mulf %223, %120 : vector<8x256xf32>
    %cst_86 = arith.constant -1.000000e+00 : f32
    %225 = vector.broadcast %cst_86 : f32 to vector<8x256xf32>
    %226 = arith.subf %225, %50 : vector<8x256xf32>
    %cst_87 = arith.constant 1.250000e+00 : f32
    %227 = vector.broadcast %cst_87 : f32 to vector<8x256xf32>
    %228 = arith.mulf %226, %227 : vector<8x256xf32>
    %229 = arith.mulf %228, %131 : vector<8x256xf32>
    %230 = arith.addf %224, %229 : vector<8x256xf32>
    %cst_88 = arith.constant -1.800000e+00 : f32
    %231 = vector.broadcast %cst_88 : f32 to vector<8x256xf32>
    %232 = arith.subf %50, %231 : vector<8x256xf32>
    %cst_89 = arith.constant 1.250000e+00 : f32
    %233 = vector.broadcast %cst_89 : f32 to vector<8x256xf32>
    %234 = arith.mulf %232, %233 : vector<8x256xf32>
    %235 = arith.mulf %234, %131 : vector<8x256xf32>
    %cst_90 = arith.constant -6.000000e-01 : f32
    %236 = vector.broadcast %cst_90 : f32 to vector<8x256xf32>
    %237 = arith.subf %236, %50 : vector<8x256xf32>
    %cst_91 = arith.constant 1.250000e+00 : f32
    %238 = vector.broadcast %cst_91 : f32 to vector<8x256xf32>
    %239 = arith.mulf %237, %238 : vector<8x256xf32>
    %240 = arith.mulf %239, %142 : vector<8x256xf32>
    %241 = arith.addf %235, %240 : vector<8x256xf32>
    %cst_92 = arith.constant -1.400000e+00 : f32
    %242 = vector.broadcast %cst_92 : f32 to vector<8x256xf32>
    %243 = arith.subf %50, %242 : vector<8x256xf32>
    %cst_93 = arith.constant 1.250000e+00 : f32
    %244 = vector.broadcast %cst_93 : f32 to vector<8x256xf32>
    %245 = arith.mulf %243, %244 : vector<8x256xf32>
    %246 = arith.mulf %245, %142 : vector<8x256xf32>
    %cst_94 = arith.constant -2.000000e-01 : f32
    %247 = vector.broadcast %cst_94 : f32 to vector<8x256xf32>
    %248 = arith.subf %247, %50 : vector<8x256xf32>
    %cst_95 = arith.constant 1.250000e+00 : f32
    %249 = vector.broadcast %cst_95 : f32 to vector<8x256xf32>
    %250 = arith.mulf %248, %249 : vector<8x256xf32>
    %251 = arith.mulf %250, %153 : vector<8x256xf32>
    %252 = arith.addf %246, %251 : vector<8x256xf32>
    %cst_96 = arith.constant -1.000000e+00 : f32
    %253 = vector.broadcast %cst_96 : f32 to vector<8x256xf32>
    %254 = arith.subf %50, %253 : vector<8x256xf32>
    %cst_97 = arith.constant 1.250000e+00 : f32
    %255 = vector.broadcast %cst_97 : f32 to vector<8x256xf32>
    %256 = arith.mulf %254, %255 : vector<8x256xf32>
    %257 = arith.mulf %256, %153 : vector<8x256xf32>
    %cst_98 = arith.constant 2.000000e-01 : f32
    %258 = vector.broadcast %cst_98 : f32 to vector<8x256xf32>
    %259 = arith.subf %258, %50 : vector<8x256xf32>
    %cst_99 = arith.constant 1.250000e+00 : f32
    %260 = vector.broadcast %cst_99 : f32 to vector<8x256xf32>
    %261 = arith.mulf %259, %260 : vector<8x256xf32>
    %262 = arith.mulf %261, %164 : vector<8x256xf32>
    %263 = arith.addf %257, %262 : vector<8x256xf32>
    %cst_100 = arith.constant -6.000000e-01 : f32
    %264 = vector.broadcast %cst_100 : f32 to vector<8x256xf32>
    %265 = arith.subf %50, %264 : vector<8x256xf32>
    %cst_101 = arith.constant 1.250000e+00 : f32
    %266 = vector.broadcast %cst_101 : f32 to vector<8x256xf32>
    %267 = arith.mulf %265, %266 : vector<8x256xf32>
    %268 = arith.mulf %267, %164 : vector<8x256xf32>
    %cst_102 = arith.constant 6.000000e-01 : f32
    %269 = vector.broadcast %cst_102 : f32 to vector<8x256xf32>
    %270 = arith.subf %269, %50 : vector<8x256xf32>
    %cst_103 = arith.constant 1.250000e+00 : f32
    %271 = vector.broadcast %cst_103 : f32 to vector<8x256xf32>
    %272 = arith.mulf %270, %271 : vector<8x256xf32>
    %273 = arith.mulf %272, %175 : vector<8x256xf32>
    %274 = arith.addf %268, %273 : vector<8x256xf32>
    %cst_104 = arith.constant -2.000000e-01 : f32
    %275 = vector.broadcast %cst_104 : f32 to vector<8x256xf32>
    %276 = arith.subf %50, %275 : vector<8x256xf32>
    %cst_105 = arith.constant 1.250000e+00 : f32
    %277 = vector.broadcast %cst_105 : f32 to vector<8x256xf32>
    %278 = arith.mulf %276, %277 : vector<8x256xf32>
    %279 = arith.mulf %278, %175 : vector<8x256xf32>
    %cst_106 = arith.constant 1.000000e+00 : f32
    %280 = vector.broadcast %cst_106 : f32 to vector<8x256xf32>
    %281 = arith.subf %280, %50 : vector<8x256xf32>
    %cst_107 = arith.constant 1.250000e+00 : f32
    %282 = vector.broadcast %cst_107 : f32 to vector<8x256xf32>
    %283 = arith.mulf %281, %282 : vector<8x256xf32>
    %284 = arith.mulf %283, %186 : vector<8x256xf32>
    %285 = arith.addf %279, %284 : vector<8x256xf32>
    %cst_108 = arith.constant 2.000000e-01 : f32
    %286 = vector.broadcast %cst_108 : f32 to vector<8x256xf32>
    %287 = arith.subf %50, %286 : vector<8x256xf32>
    %cst_109 = arith.constant 1.250000e+00 : f32
    %288 = vector.broadcast %cst_109 : f32 to vector<8x256xf32>
    %289 = arith.mulf %287, %288 : vector<8x256xf32>
    %290 = arith.mulf %289, %186 : vector<8x256xf32>
    %cst_110 = arith.constant 1.400000e+00 : f32
    %291 = vector.broadcast %cst_110 : f32 to vector<8x256xf32>
    %292 = arith.subf %291, %50 : vector<8x256xf32>
    %cst_111 = arith.constant 1.250000e+00 : f32
    %293 = vector.broadcast %cst_111 : f32 to vector<8x256xf32>
    %294 = arith.mulf %292, %293 : vector<8x256xf32>
    %295 = arith.mulf %294, %197 : vector<8x256xf32>
    %296 = arith.addf %290, %295 : vector<8x256xf32>
    %cst_112 = arith.constant 6.000000e-01 : f32
    %297 = vector.broadcast %cst_112 : f32 to vector<8x256xf32>
    %298 = arith.subf %50, %297 : vector<8x256xf32>
    %cst_113 = arith.constant 1.250000e+00 : f32
    %299 = vector.broadcast %cst_113 : f32 to vector<8x256xf32>
    %300 = arith.mulf %298, %299 : vector<8x256xf32>
    %301 = arith.mulf %300, %197 : vector<8x256xf32>
    %cst_114 = arith.constant 1.800000e+00 : f32
    %302 = vector.broadcast %cst_114 : f32 to vector<8x256xf32>
    %303 = arith.subf %302, %50 : vector<8x256xf32>
    %cst_115 = arith.constant 1.250000e+00 : f32
    %304 = vector.broadcast %cst_115 : f32 to vector<8x256xf32>
    %305 = arith.mulf %303, %304 : vector<8x256xf32>
    %306 = arith.mulf %305, %208 : vector<8x256xf32>
    %307 = arith.addf %301, %306 : vector<8x256xf32>
    %cst_116 = arith.constant 1.000000e+00 : f32
    %308 = vector.broadcast %cst_116 : f32 to vector<8x256xf32>
    %309 = arith.subf %50, %308 : vector<8x256xf32>
    %cst_117 = arith.constant 1.250000e+00 : f32
    %310 = vector.broadcast %cst_117 : f32 to vector<8x256xf32>
    %311 = arith.mulf %309, %310 : vector<8x256xf32>
    %312 = arith.mulf %311, %208 : vector<8x256xf32>
    %cst_118 = arith.constant 2.200000e+00 : f32
    %313 = vector.broadcast %cst_118 : f32 to vector<8x256xf32>
    %314 = arith.subf %313, %50 : vector<8x256xf32>
    %cst_119 = arith.constant 1.250000e+00 : f32
    %315 = vector.broadcast %cst_119 : f32 to vector<8x256xf32>
    %316 = arith.mulf %314, %315 : vector<8x256xf32>
    %317 = arith.mulf %316, %219 : vector<8x256xf32>
    %318 = arith.addf %312, %317 : vector<8x256xf32>
    %cst_120 = arith.constant -2.200000e+00 : f32
    %319 = vector.broadcast %cst_120 : f32 to vector<8x256xf32>
    %320 = arith.subf %50, %319 : vector<8x256xf32>
    %cst_121 = arith.constant 0.833333313 : f32
    %321 = vector.broadcast %cst_121 : f32 to vector<8x256xf32>
    %322 = arith.mulf %320, %321 : vector<8x256xf32>
    %323 = arith.mulf %322, %230 : vector<8x256xf32>
    %cst_122 = arith.constant -6.000000e-01 : f32
    %324 = vector.broadcast %cst_122 : f32 to vector<8x256xf32>
    %325 = arith.subf %324, %50 : vector<8x256xf32>
    %cst_123 = arith.constant 0.833333313 : f32
    %326 = vector.broadcast %cst_123 : f32 to vector<8x256xf32>
    %327 = arith.mulf %325, %326 : vector<8x256xf32>
    %328 = arith.mulf %327, %241 : vector<8x256xf32>
    %329 = arith.addf %323, %328 : vector<8x256xf32>
    %cst_124 = arith.constant -1.800000e+00 : f32
    %330 = vector.broadcast %cst_124 : f32 to vector<8x256xf32>
    %331 = arith.subf %50, %330 : vector<8x256xf32>
    %cst_125 = arith.constant 0.833333313 : f32
    %332 = vector.broadcast %cst_125 : f32 to vector<8x256xf32>
    %333 = arith.mulf %331, %332 : vector<8x256xf32>
    %334 = arith.mulf %333, %241 : vector<8x256xf32>
    %cst_126 = arith.constant -2.000000e-01 : f32
    %335 = vector.broadcast %cst_126 : f32 to vector<8x256xf32>
    %336 = arith.subf %335, %50 : vector<8x256xf32>
    %cst_127 = arith.constant 0.833333313 : f32
    %337 = vector.broadcast %cst_127 : f32 to vector<8x256xf32>
    %338 = arith.mulf %336, %337 : vector<8x256xf32>
    %339 = arith.mulf %338, %252 : vector<8x256xf32>
    %340 = arith.addf %334, %339 : vector<8x256xf32>
    %cst_128 = arith.constant -1.400000e+00 : f32
    %341 = vector.broadcast %cst_128 : f32 to vector<8x256xf32>
    %342 = arith.subf %50, %341 : vector<8x256xf32>
    %cst_129 = arith.constant 0.833333313 : f32
    %343 = vector.broadcast %cst_129 : f32 to vector<8x256xf32>
    %344 = arith.mulf %342, %343 : vector<8x256xf32>
    %345 = arith.mulf %344, %252 : vector<8x256xf32>
    %cst_130 = arith.constant 2.000000e-01 : f32
    %346 = vector.broadcast %cst_130 : f32 to vector<8x256xf32>
    %347 = arith.subf %346, %50 : vector<8x256xf32>
    %cst_131 = arith.constant 0.833333313 : f32
    %348 = vector.broadcast %cst_131 : f32 to vector<8x256xf32>
    %349 = arith.mulf %347, %348 : vector<8x256xf32>
    %350 = arith.mulf %349, %263 : vector<8x256xf32>
    %351 = arith.addf %345, %350 : vector<8x256xf32>
    %cst_132 = arith.constant -1.000000e+00 : f32
    %352 = vector.broadcast %cst_132 : f32 to vector<8x256xf32>
    %353 = arith.subf %50, %352 : vector<8x256xf32>
    %cst_133 = arith.constant 0.833333313 : f32
    %354 = vector.broadcast %cst_133 : f32 to vector<8x256xf32>
    %355 = arith.mulf %353, %354 : vector<8x256xf32>
    %356 = arith.mulf %355, %263 : vector<8x256xf32>
    %cst_134 = arith.constant 6.000000e-01 : f32
    %357 = vector.broadcast %cst_134 : f32 to vector<8x256xf32>
    %358 = arith.subf %357, %50 : vector<8x256xf32>
    %cst_135 = arith.constant 0.833333313 : f32
    %359 = vector.broadcast %cst_135 : f32 to vector<8x256xf32>
    %360 = arith.mulf %358, %359 : vector<8x256xf32>
    %361 = arith.mulf %360, %274 : vector<8x256xf32>
    %362 = arith.addf %356, %361 : vector<8x256xf32>
    %cst_136 = arith.constant -6.000000e-01 : f32
    %363 = vector.broadcast %cst_136 : f32 to vector<8x256xf32>
    %364 = arith.subf %50, %363 : vector<8x256xf32>
    %cst_137 = arith.constant 0.833333313 : f32
    %365 = vector.broadcast %cst_137 : f32 to vector<8x256xf32>
    %366 = arith.mulf %364, %365 : vector<8x256xf32>
    %367 = arith.mulf %366, %274 : vector<8x256xf32>
    %cst_138 = arith.constant 1.000000e+00 : f32
    %368 = vector.broadcast %cst_138 : f32 to vector<8x256xf32>
    %369 = arith.subf %368, %50 : vector<8x256xf32>
    %cst_139 = arith.constant 0.833333313 : f32
    %370 = vector.broadcast %cst_139 : f32 to vector<8x256xf32>
    %371 = arith.mulf %369, %370 : vector<8x256xf32>
    %372 = arith.mulf %371, %285 : vector<8x256xf32>
    %373 = arith.addf %367, %372 : vector<8x256xf32>
    %cst_140 = arith.constant -2.000000e-01 : f32
    %374 = vector.broadcast %cst_140 : f32 to vector<8x256xf32>
    %375 = arith.subf %50, %374 : vector<8x256xf32>
    %cst_141 = arith.constant 0.833333313 : f32
    %376 = vector.broadcast %cst_141 : f32 to vector<8x256xf32>
    %377 = arith.mulf %375, %376 : vector<8x256xf32>
    %378 = arith.mulf %377, %285 : vector<8x256xf32>
    %cst_142 = arith.constant 1.400000e+00 : f32
    %379 = vector.broadcast %cst_142 : f32 to vector<8x256xf32>
    %380 = arith.subf %379, %50 : vector<8x256xf32>
    %cst_143 = arith.constant 0.833333313 : f32
    %381 = vector.broadcast %cst_143 : f32 to vector<8x256xf32>
    %382 = arith.mulf %380, %381 : vector<8x256xf32>
    %383 = arith.mulf %382, %296 : vector<8x256xf32>
    %384 = arith.addf %378, %383 : vector<8x256xf32>
    %cst_144 = arith.constant 2.000000e-01 : f32
    %385 = vector.broadcast %cst_144 : f32 to vector<8x256xf32>
    %386 = arith.subf %50, %385 : vector<8x256xf32>
    %cst_145 = arith.constant 0.833333313 : f32
    %387 = vector.broadcast %cst_145 : f32 to vector<8x256xf32>
    %388 = arith.mulf %386, %387 : vector<8x256xf32>
    %389 = arith.mulf %388, %296 : vector<8x256xf32>
    %cst_146 = arith.constant 1.800000e+00 : f32
    %390 = vector.broadcast %cst_146 : f32 to vector<8x256xf32>
    %391 = arith.subf %390, %50 : vector<8x256xf32>
    %cst_147 = arith.constant 0.833333313 : f32
    %392 = vector.broadcast %cst_147 : f32 to vector<8x256xf32>
    %393 = arith.mulf %391, %392 : vector<8x256xf32>
    %394 = arith.mulf %393, %307 : vector<8x256xf32>
    %395 = arith.addf %389, %394 : vector<8x256xf32>
    %cst_148 = arith.constant 6.000000e-01 : f32
    %396 = vector.broadcast %cst_148 : f32 to vector<8x256xf32>
    %397 = arith.subf %50, %396 : vector<8x256xf32>
    %cst_149 = arith.constant 0.833333313 : f32
    %398 = vector.broadcast %cst_149 : f32 to vector<8x256xf32>
    %399 = arith.mulf %397, %398 : vector<8x256xf32>
    %400 = arith.mulf %399, %307 : vector<8x256xf32>
    %cst_150 = arith.constant 2.200000e+00 : f32
    %401 = vector.broadcast %cst_150 : f32 to vector<8x256xf32>
    %402 = arith.subf %401, %50 : vector<8x256xf32>
    %cst_151 = arith.constant 0.833333313 : f32
    %403 = vector.broadcast %cst_151 : f32 to vector<8x256xf32>
    %404 = arith.mulf %402, %403 : vector<8x256xf32>
    %405 = arith.mulf %404, %318 : vector<8x256xf32>
    %406 = arith.addf %400, %405 : vector<8x256xf32>
    %cst_152 = arith.constant 0.000000e+00 : f32
    %407 = vector.broadcast %cst_152 : f32 to vector<8x256xf32>
    %c0_153 = arith.constant 0 : index
    %c0_154 = arith.constant 0 : index
    %408 = vector.load %arg10[%c0_153, %c0_154] : memref<64x256xf32, #tpu.memory_space<vmem>>, vector<8x256xf32>
    %409 = arith.mulf %408, %329 : vector<8x256xf32>
    %410 = arith.addf %407, %409 : vector<8x256xf32>
    %c8_155 = arith.constant 8 : index
    %c0_156 = arith.constant 0 : index
    %411 = vector.load %arg10[%c8_155, %c0_156] : memref<64x256xf32, #tpu.memory_space<vmem>>, vector<8x256xf32>
    %412 = arith.mulf %411, %340 : vector<8x256xf32>
    %413 = arith.addf %410, %412 : vector<8x256xf32>
    %c16_157 = arith.constant 16 : index
    %c0_158 = arith.constant 0 : index
    %414 = vector.load %arg10[%c16_157, %c0_158] : memref<64x256xf32, #tpu.memory_space<vmem>>, vector<8x256xf32>
    %415 = arith.mulf %414, %351 : vector<8x256xf32>
    %416 = arith.addf %413, %415 : vector<8x256xf32>
    %c24_159 = arith.constant 24 : index
    %c0_160 = arith.constant 0 : index
    %417 = vector.load %arg10[%c24_159, %c0_160] : memref<64x256xf32, #tpu.memory_space<vmem>>, vector<8x256xf32>
    %418 = arith.mulf %417, %362 : vector<8x256xf32>
    %419 = arith.addf %416, %418 : vector<8x256xf32>
    %c32_161 = arith.constant 32 : index
    %c0_162 = arith.constant 0 : index
    %420 = vector.load %arg10[%c32_161, %c0_162] : memref<64x256xf32, #tpu.memory_space<vmem>>, vector<8x256xf32>
    %421 = arith.mulf %420, %373 : vector<8x256xf32>
    %422 = arith.addf %419, %421 : vector<8x256xf32>
    %c40_163 = arith.constant 40 : index
    %c0_164 = arith.constant 0 : index
    %423 = vector.load %arg10[%c40_163, %c0_164] : memref<64x256xf32, #tpu.memory_space<vmem>>, vector<8x256xf32>
    %424 = arith.mulf %423, %384 : vector<8x256xf32>
    %425 = arith.addf %422, %424 : vector<8x256xf32>
    %c48_165 = arith.constant 48 : index
    %c0_166 = arith.constant 0 : index
    %426 = vector.load %arg10[%c48_165, %c0_166] : memref<64x256xf32, #tpu.memory_space<vmem>>, vector<8x256xf32>
    %427 = arith.mulf %426, %395 : vector<8x256xf32>
    %428 = arith.addf %425, %427 : vector<8x256xf32>
    %c56_167 = arith.constant 56 : index
    %c0_168 = arith.constant 0 : index
    %429 = vector.load %arg10[%c56_167, %c0_168] : memref<64x256xf32, #tpu.memory_space<vmem>>, vector<8x256xf32>
    %430 = arith.mulf %429, %406 : vector<8x256xf32>
    %431 = arith.addf %428, %430 : vector<8x256xf32>
    %cst_169 = arith.constant 0.000000e+00 : f32
    %432 = vector.broadcast %cst_169 : f32 to vector<8x256xf32>
    %433 = arith.subf %432, %50 : vector<8x256xf32>
    %434 = math.exp %433 : vector<8x256xf32>
    %cst_170 = arith.constant 1.000000e+00 : f32
    %435 = vector.broadcast %cst_170 : f32 to vector<8x256xf32>
    %436 = arith.addf %435, %434 : vector<8x256xf32>
    %437 = tpu.reciprocal %436 {approx = true} : vector<8x256xf32> -> vector<8x256xf32>
    %c0_171 = arith.constant 0 : index
    %c0_172 = arith.constant 0 : index
    %438 = vector.load %arg5[%c0_171, %c0_172] : memref<8x1xf32, #tpu.memory_space<vmem>>, vector<8x1xf32>
    %439 = arith.mulf %50, %437 : vector<8x256xf32>
    %440 = vector.broadcast %438 : vector<8x1xf32> to vector<8x256xf32>
    %441 = arith.mulf %440, %439 : vector<8x256xf32>
    %442 = arith.addf %431, %441 : vector<8x256xf32>
    %c0_173 = arith.constant 0 : index
    %c0_174 = arith.constant 0 : index
    %443 = vector.load %arg6[%c0_173, %c0_174] : memref<8x4xf32, #tpu.memory_space<vmem>>, vector<8x4xf32>
    %c0_175 = arith.constant 0 : index
    %c0_176 = arith.constant 0 : index
    %444 = vector.load %arg7[%c0_175, %c0_176] : memref<8x1xf32, #tpu.memory_space<vmem>>, vector<8x1xf32>
    %445 = vector.extract_strided_slice %443 {offsets = [0, 0], sizes = [8, 1], strides = [1, 1]} : vector<8x4xf32> to vector<8x1xf32>
    %446 = vector.extract_strided_slice %442 {offsets = [0, 0], sizes = [1, 256], strides = [1, 1]} : vector<8x256xf32> to vector<1x256xf32>
    %447 = vector.broadcast %445 : vector<8x1xf32> to vector<8x256xf32>
    %448 = vector.broadcast %446 : vector<1x256xf32> to vector<8x256xf32>
    %449 = arith.mulf %447, %448 : vector<8x256xf32>
    %450 = vector.broadcast %444 : vector<8x1xf32> to vector<8x256xf32>
    %451 = arith.addf %450, %449 : vector<8x256xf32>
    %452 = vector.extract_strided_slice %443 {offsets = [0, 1], sizes = [8, 1], strides = [1, 1]} : vector<8x4xf32> to vector<8x1xf32>
    %453 = vector.extract_strided_slice %442 {offsets = [1, 0], sizes = [1, 256], strides = [1, 1]} : vector<8x256xf32> to vector<1x256xf32>
    %454 = vector.broadcast %452 : vector<8x1xf32> to vector<8x256xf32>
    %455 = vector.broadcast %453 : vector<1x256xf32> to vector<8x256xf32>
    %456 = arith.mulf %454, %455 : vector<8x256xf32>
    %457 = arith.addf %451, %456 : vector<8x256xf32>
    %458 = vector.extract_strided_slice %443 {offsets = [0, 2], sizes = [8, 1], strides = [1, 1]} : vector<8x4xf32> to vector<8x1xf32>
    %459 = vector.extract_strided_slice %442 {offsets = [2, 0], sizes = [1, 256], strides = [1, 1]} : vector<8x256xf32> to vector<1x256xf32>
    %460 = vector.broadcast %458 : vector<8x1xf32> to vector<8x256xf32>
    %461 = vector.broadcast %459 : vector<1x256xf32> to vector<8x256xf32>
    %462 = arith.mulf %460, %461 : vector<8x256xf32>
    %463 = arith.addf %457, %462 : vector<8x256xf32>
    %464 = vector.extract_strided_slice %443 {offsets = [0, 3], sizes = [8, 1], strides = [1, 1]} : vector<8x4xf32> to vector<8x1xf32>
    %465 = vector.extract_strided_slice %442 {offsets = [3, 0], sizes = [1, 256], strides = [1, 1]} : vector<8x256xf32> to vector<1x256xf32>
    %466 = vector.broadcast %464 : vector<8x1xf32> to vector<8x256xf32>
    %467 = vector.broadcast %465 : vector<1x256xf32> to vector<8x256xf32>
    %468 = arith.mulf %466, %467 : vector<8x256xf32>
    %469 = arith.addf %463, %468 : vector<8x256xf32>
    %470 = vector.extract_strided_slice %443 {offsets = [0, 0], sizes = [8, 1], strides = [1, 1]} : vector<8x4xf32> to vector<8x1xf32>
    %471 = vector.extract_strided_slice %442 {offsets = [4, 0], sizes = [1, 256], strides = [1, 1]} : vector<8x256xf32> to vector<1x256xf32>
    %472 = vector.broadcast %470 : vector<8x1xf32> to vector<8x256xf32>
    %473 = vector.broadcast %471 : vector<1x256xf32> to vector<8x256xf32>
    %474 = arith.mulf %472, %473 : vector<8x256xf32>
    %475 = vector.broadcast %444 : vector<8x1xf32> to vector<8x256xf32>
    %476 = arith.addf %475, %474 : vector<8x256xf32>
    %477 = vector.extract_strided_slice %443 {offsets = [0, 1], sizes = [8, 1], strides = [1, 1]} : vector<8x4xf32> to vector<8x1xf32>
    %478 = vector.extract_strided_slice %442 {offsets = [5, 0], sizes = [1, 256], strides = [1, 1]} : vector<8x256xf32> to vector<1x256xf32>
    %479 = vector.broadcast %477 : vector<8x1xf32> to vector<8x256xf32>
    %480 = vector.broadcast %478 : vector<1x256xf32> to vector<8x256xf32>
    %481 = arith.mulf %479, %480 : vector<8x256xf32>
    %482 = arith.addf %476, %481 : vector<8x256xf32>
    %483 = vector.extract_strided_slice %443 {offsets = [0, 2], sizes = [8, 1], strides = [1, 1]} : vector<8x4xf32> to vector<8x1xf32>
    %484 = vector.extract_strided_slice %442 {offsets = [6, 0], sizes = [1, 256], strides = [1, 1]} : vector<8x256xf32> to vector<1x256xf32>
    %485 = vector.broadcast %483 : vector<8x1xf32> to vector<8x256xf32>
    %486 = vector.broadcast %484 : vector<1x256xf32> to vector<8x256xf32>
    %487 = arith.mulf %485, %486 : vector<8x256xf32>
    %488 = arith.addf %482, %487 : vector<8x256xf32>
    %489 = vector.extract_strided_slice %443 {offsets = [0, 3], sizes = [8, 1], strides = [1, 1]} : vector<8x4xf32> to vector<8x1xf32>
    %490 = vector.extract_strided_slice %442 {offsets = [7, 0], sizes = [1, 256], strides = [1, 1]} : vector<8x256xf32> to vector<1x256xf32>
    %491 = vector.broadcast %489 : vector<8x1xf32> to vector<8x256xf32>
    %492 = vector.broadcast %490 : vector<1x256xf32> to vector<8x256xf32>
    %493 = arith.mulf %491, %492 : vector<8x256xf32>
    %494 = arith.addf %488, %493 : vector<8x256xf32>
    %c0_177 = arith.constant 0 : index
    %c0_178 = arith.constant 0 : index
    %c0_179 = arith.constant 0 : index
    %495 = vector.load %arg8[%c0_177, %c0_178, %c0_179] : memref<1x16x256xf32, #tpu.memory_space<vmem>>, vector<1x8x256xf32>
    %496 = vector.shape_cast %495 : vector<1x8x256xf32> to vector<8x256xf32>
    %497 = vector.shape_cast %469 : vector<8x256xf32> to vector<1x8x256xf32>
    tpu.vector_store %arg8[%c0_177, %c0_178, %c0_179], %497 {strides = array<i32>} : memref<1x16x256xf32, #tpu.memory_space<vmem>>, vector<1x8x256xf32>,
    %c0_180 = arith.constant 0 : index
    %c8_181 = arith.constant 8 : index
    %c0_182 = arith.constant 0 : index
    %498 = vector.load %arg8[%c0_180, %c8_181, %c0_182] : memref<1x16x256xf32, #tpu.memory_space<vmem>>, vector<1x8x256xf32>
    %499 = vector.shape_cast %498 : vector<1x8x256xf32> to vector<8x256xf32>
    %500 = vector.shape_cast %494 : vector<8x256xf32> to vector<1x8x256xf32>
    tpu.vector_store %arg8[%c0_180, %c8_181, %c0_182], %500 {strides = array<i32>} : memref<1x16x256xf32, #tpu.memory_space<vmem>>, vector<1x8x256xf32>,
    return
  }
  func.func @transform_0(%arg0: i32) -> (i32, i32) {
    %c0_i32 = arith.constant 0 : i32
    %c0_i32_0 = arith.constant 0 : i32
    %c0_i32_1 = arith.constant 0 : i32
    return %c0_i32, %c0_i32_0 : i32, i32
  }
  func.func @transform_1(%arg0: i32) -> (i32, i32, i32) {
    %c0_i32 = arith.constant 0 : i32
    %c0_i32_0 = arith.constant 0 : i32
    %c0_i32_1 = arith.constant 0 : i32
    return %arg0, %c0_i32, %c0_i32_0 : i32, i32, i32
  }
  func.func @transform_2(%arg0: i32) -> (i32, i32) {
    %c0_i32 = arith.constant 0 : i32
    %c0_i32_0 = arith.constant 0 : i32
    %c0_i32_1 = arith.constant 0 : i32
    return %c0_i32, %c0_i32_0 : i32, i32
  }
  func.func @transform_3(%arg0: i32) -> (i32, i32) {
    %c0_i32 = arith.constant 0 : i32
    %c0_i32_0 = arith.constant 0 : i32
    %c0_i32_1 = arith.constant 0 : i32
    return %c0_i32, %c0_i32_0 : i32, i32
  }
  func.func @transform_4(%arg0: i32) -> (i32, i32) {
    %c0_i32 = arith.constant 0 : i32
    %c0_i32_0 = arith.constant 0 : i32
    %c0_i32_1 = arith.constant 0 : i32
    return %c0_i32, %c0_i32_0 : i32, i32
  }
  func.func @transform_5(%arg0: i32) -> (i32, i32) {
    %c0_i32 = arith.constant 0 : i32
    %c0_i32_0 = arith.constant 0 : i32
    %c0_i32_1 = arith.constant 0 : i32
    return %c0_i32, %c0_i32_0 : i32, i32
  }
  func.func @transform_6(%arg0: i32) -> (i32, i32) {
    %c0_i32 = arith.constant 0 : i32
    %c0_i32_0 = arith.constant 0 : i32
    %c0_i32_1 = arith.constant 0 : i32
    return %c0_i32, %c0_i32_0 : i32, i32
  }
  func.func @transform_7(%arg0: i32) -> (i32, i32, i32) {
    %c0_i32 = arith.constant 0 : i32
    %c0_i32_0 = arith.constant 0 : i32
    %c0_i32_1 = arith.constant 0 : i32
    return %arg0, %c0_i32, %c0_i32_0 : i32, i32, i32
  }
}

</mosaic_0001>

<bundles_post_ra>
// kernel: tpu_custom_call.1
= control target key start
LH: loop header
LB: loop body
LE: loop exit
PB: predicated region body
PF: predicated region fallthrough
CT: control target
= control target key end

     0   :  { %12 = vsyncpa [#allocation5], 0  ;;  %s2303_s0 = inlined_call_operand.vmem [shape: f32[9,256], index: 0, kind: input, shape index: {}]   ;;  %s2304_s1 = inlined_call_operand.hbm [shape: f32[2,8,256], index: 1, kind: input, shape index: {}]   ;;  %s2305_s2 = inlined_call_operand.vmem [shape: f32[64,72], index: 2, kind: input, shape index: {}]   ;;  %s2306_s3 = inlined_call_operand.vmem [shape: f32[64,1], index: 3, kind: input, shape index: {}]   ;;  %s2307_s4 = inlined_call_operand.vmem [shape: f32[8,1], index: 4, kind: input, shape index: {}]   ;;  %s2308_s5 = inlined_call_operand.vmem [shape: f32[8,4], index: 5, kind: input, shape index: {}]   ;;  %s2309_s6 = inlined_call_operand.vmem [shape: f32[8,1], index: 6, kind: input, shape index: {}]   ;;  %s2310_s7 = inlined_call_operand.hbm [shape: f32[2,16,256], index: 7, kind: output, shape index: {}]  }
   0x1   :  { %14 = vsyncpa [#allocation5 + $0x1], 0 }
   0x2   :  { %15 = vsyncpa [#allocation6], 0 }
   0x3   :  { %17 = vsyncpa [#allocation6 + $0x1], 0  ;;  %s1613_s24 = smov 0   ;;  %s1615_s25 = smov 0  }
   0x4   :  { %s1617_s26 = smov 0   ;;  %s1619_s27 = smov 0  }
   0x5 LB: > { %s1634_s28 = sadd.s32 4294967295, %s1557_s27   ;;  %s1284_s29 = sadd.s32 4294967294, %s1557_s27   ;;  %s1557_s27 = sphi %s1619_s27, %s2340_s27   ;;  %s1553_s26 = sphi %s1617_s26, %s2339_s26   ;;  %s1549_s25 = sphi %s1615_s25, %s2338_s25   ;;  %s1545_s24 = sphi %s1613_s24, %s2337_s24  }
   0x6   : > { %s1638_s30 = sadd.s32 1, %s1557_s27   ;;  %s51_s8 = sadd.s32 1, %s1553_s26 }
   0x7   : > { %s48_s9 = ssub.s32 %s1557_s27, %s1638_s30  ;;  %p58_p0 = scmp.ne.s32.totalorder %s1553_s26, %s1549_s25 }
   0x8   : > { %p49_p1 = scmp.eq.s32.totalorder %s48_s9, 0  ;;  %p59_p2 = scmp.eq.s32.totalorder %s1557_s27, 0 }
   0x9   : > { %p64_p3 = scmp.ne.s32.totalorder %s1549_s25, %s1545_s24  ;;  %p65_p4 = scmp.eq.s32.totalorder %s1634_s28, 0 }
   0xa   : > { %s1650_s10 = scalar_select %p49_p1, %s1553_s26, %s51_s8  }
   0xb   : > { %p1652_p5 = por %p59_p2, %p58_p0  ;;  %p1656_p6 = por %p65_p4, %p64_p3 }
   0xc   : > { %2318 = sst [smem:[#allocation10_spill]] %s1650_s10  ;;  %p193_p7 = scmp.eq.s32.totalorder %s1634_s28, 1 }
   0xd   : > { %p199_p8 = scmp.eq.s32.totalorder %s1284_s29, 1  ;;  %p1397_p10 = scmp.lt.s32.totalorder %s1557_s27, 2 }
   0xe   : > { %p1663_p11 = por %p193_p7, %p58_p0  ;;  %s237_s15 = sand.u32 1, %s1553_s26  }
   0xf   : > { %p1667_p12 = por %p199_p8, %p64_p3  ;;  %s1365_s16 = sshll.u32 %s1557_s27, 4 }
  0x10   : > { %s1287_s17 = sshll.u32 %s237_s15, 4  ;;  %s246_s20 = scalar_lea.hbm %s2304_s1, %s1365_s16 }
  0x11   : > { %s248_s21 = sshll.u32 %s246_s20, 4  ;;  %s241_s22 = scalar_lea.vmem [#allocation4], %s1287_s17  ;;  %s249_s21 = int_to_ptr.hbm [resolvable:$true] %s248_s21 }
  0x12   : > { %s250_s23 = sshll.u32 %s241_s22, 4  ;;  %p1678_p13 = pnand %p1397_p10, %p1652_p5  ;;  %s251_s23 = int_to_ptr.vmem [resolvable:$true] %s250_s23 }
  0x13   : > { %p1290_p0 = scmp.ge.s32.totalorder %s1557_s27, 1  ;;  %p255_p1 = scmp.lt.s32.totalorder %s1557_s27, 3 }
  0x14   : > { %s238_s8 = scalar_lea.sflag [#allocation5], %s237_s15  ;;  %s1461_s9 = sshra.s32 %s249_s21, 4  ;;  %s1462_s9 = int_to_ptr.hbm [resolvable:$true] %s1461_s9 }
  0x15   : > { %s1463_s10 = scalar_lea.hbm %s1462_s9, 16  ;;  %p1465_p3 = pneg %p1678_p13 }
  0x16   : > { %p1464_p2 = scmp.ne.s32.totalorder %s1462_s9, %s1463_s10  ;;  %s1468_s11 = scalar_lea.hbm %s2304_s1, 32 }
  0x17   : > { %p1469_p5 = scmp.lt.s32.totalorder %s1462_s9, %s2304_s1  ;;  %p1470_p8 = scmp.lt.s32.totalorder %s1468_s11, %s1463_s10 }
  0x18   : > { %p1466_p4 = pnand %p1465_p3, %p1464_p2 }
  0x19   : > { %p1471_p10 = por %p1470_p8, %p1469_p5 }
  0x1a   : > { %p1467_p7 = pneg %p1466_p4 }
  0x1c   : > { %p1472_p9 = pnand %p1471_p10, %p1467_p7 }
  0x1e   : > { %1475 = shalt.err (!%p1472_p9)
}
  0x1f   : > { %1392 = dma.hbm_to_vmem [thread:$0]  (!%p1678_p13), %s249_s21, 256, %s251_s23, %s238_s8  }
  0x20   : > { %p256_p2 = pnand %p1290_p0, %p255_p1 }
  0x22   : > { %259 = sbr.rel (%p256_p2) target bundleno = 409 (0x199), region = 48 }
  0x27   : > { %s1699_s15 = sand.u32 1, %s1549_s25  }
  0x28   : > { %s1291_s20 = sshll.u32 %s1699_s15, 4  ;;  %s262_s10 = scalar_lea.sflag [#allocation5], %s1699_s15 }
  0x29   : > { %s1703_s22 = scalar_lea.vmem [#allocation4], %s1291_s20 }
  0x2a   : > { %1536 = dma.done.wait (%p1656_p6), %s262_s10, 256  }
  0x2b   : > { %1538 = vsyncadd (%p1656_p6), %s262_s10, 4294967040  ;;  %v1710_v0 = vld [vmem:[%s1703_s22] sm:$0xff]  ;;  %s1559_s21 = smov 112   ;;  %s1560_s23 = smov 111   ;;  %v1716_v1 = vld [vmem:[%s1703_s22 + $0x8] sm:$0xff]  ;;  %v318_v3 = vlaneseq  ;;  %v1567_v42 = vmov 0  }
  0x2c   : > { %414 = vrot.lane.b32.xlu1 %v1710_v0, %s1559_s21  ;;  %430 = vrot.lane.b32.xlu0 %v1710_v0, %s1560_s23  ;;  %s1561_s29 = smov 113   ;;  %s1562_s12 = smov 127   ;;  %v1299_v7 = vld [vmem:[%s2303_s0 + $0x10] ss:$8 sm:$0x3]  ;;  %v472_v37 = vld [vmem:[%s2306_s3] sm:$0xff] }
  0x2d   : > { %398 = vrot.lane.b32.xlu2 %v1710_v0, %s1561_s29  ;;  %s1563_s8 = smov 1   ;;  %s1564_s9 = smov 15   ;;  %v1733_v6 = vand.u32 127, %v318_v3  ;;  %v1298_v9 = vld [vmem:[%s2303_s0 + $0x7] ss:$8 sm:$0x3]  ;;  %1445 = vset.pattern.permute.xlu1 %v1567_v42 }
  0x2e   : > { %s1565_s16 = smov 16   ;;  %s1566_s17 = smov 17   ;;  %v438_v10 = vperm.slane %v1299_v7, 0  ;;  %v439_v11 = vperm.slane %v1299_v7, 1  ;;  %v422_v15 = vperm.slane %v1298_v9, 0  ;;  %v423_v19 = vperm.slane %v1298_v9, 1  ;;  %1447 = vset.pattern.permute.xlu0 %v1567_v42  ;;  %1446 = vset.pattern.permute.xlu2 %v1567_v42 }
  0x2f   : > { %vm418_vm0 = vcmp.lt.s32.totalorder %v1733_v6, 112  ;;  %vm434_vm1 = vcmp.lt.s32.totalorder %v1733_v6, 111  ;;  %v1297_v12 = vld [vmem:[%s2303_s0 + $0x6] ss:$8 sm:$0x3]  ;;  %vm402_vm2 = vcmp.lt.s32.totalorder %v1733_v6, 113 }
  0x30   : > { %v406_v23 = vperm.slane %v1297_v12, 0  ;;  %v407_v25 = vperm.slane %v1297_v12, 1  ;;  %v1296_v26 = vld [vmem:[%s2303_s0 + $0x5] ss:$8 sm:$0x3]  ;;  %vm386_vm3 = vcmp.lt.s32.totalorder %v1733_v6, 127 }
  0x31   : > { %v390_v32 = vperm.slane %v1296_v26, 0  ;;  %v391_v33 = vperm.slane %v1296_v26, 1  ;;  %v1295_v43 = vld [vmem:[%s2303_s0 + $0x3] ss:$8 sm:$0x3]  ;;  %vm368_vm4 = vcmp.lt.s32.totalorder %v1733_v6, 1 }
  0x32   : > { %v1294_v44 = vld [vmem:[%s2303_s0 + $0x2] ss:$8 sm:$0x3]  ;;  %v372_v45 = vperm.slane %v1295_v43, 0  ;;  %v373_v46 = vperm.slane %v1295_v43, 1  ;;  %vm352_vm5 = vcmp.lt.s32.totalorder %v1733_v6, 15 }
  0x33   : > { %v356_v48 = vperm.slane %v1294_v44, 0  ;;  %v357_v49 = vperm.slane %v1294_v44, 1  ;;  %v475_v52 = vld [vmem:[%s2306_s3 + $0x18] sm:$0xff]  ;;  %v1293_v61 = vld [vmem:[%s2303_s0 + $0x1] ss:$8 sm:$0x3] }
  0x34   : > { %416 = vrot.lane.b32.xlu1 %v1716_v1, %s1559_s21  ;;  %432 = vrot.lane.b32.xlu0 %v1716_v1, %s1560_s23  ;;  %vm336_vm6 = vcmp.lt.s32.totalorder %v1733_v6, 16  ;;  %v340_v62 = vperm.slane %v1293_v61, 0  ;;  %v341_v63 = vperm.slane %v1293_v61, 1  ;;  %v473_v3 = vld [vmem:[%s2306_s3 + $0x8] sm:$0xff]  ;;  %vm320_vm7 = vcmp.lt.s32.totalorder %v1733_v6, 17  ;;  %v478_v26 = vld [vmem:[%s2306_s3 + $0x30] sm:$0xff] }
  0x35   : > { %400 = vrot.lane.b32.xlu2 %v1716_v1, %s1561_s29  ;;  %v477_v7 = vld [vmem:[%s2306_s3 + $0x28] sm:$0xff]  ;;  %vm520_vm8 = vcmask 588800   ;;  %vm645_vm9 = vcmp.ge.f32.partialorder %v1710_v0, -2.2  ;;  %vm651_vm10 = vcmp.ge.f32.partialorder %v1710_v0, -1.8 }
  0x36   : > { %v297_v12 = vld [vmem:[%s2303_s0] ss:$8 sm:$0x3]  ;;  %vm667_vm11 = vcmp.ge.f32.partialorder %v1710_v0, -1.0  ;;  %vm659_vm12 = vcmp.ge.f32.partialorder %v1710_v0, -1.4 }
  0x37   : > { %vm675_vm13 = vcmp.ge.f32.partialorder %v1710_v0, -0.6  ;;  %v1340_v42 = vadd.f32 2.2, %v1710_v0  ;;  %vm646_vm14 = vcmp.ge.f32.partialorder %v1716_v1, -2.2 }
  0x38   : > { %vm652_vm15 = vcmp.ge.f32.partialorder %v1716_v1, -1.8  ;;  %s1366_s23 = sshll.u32 %s1634_s28, 5  ;;  %s1196_s11 = scalar_lea.sflag [#allocation6], %s1699_s15 }
  0x39   : > { %s1511_s21 = scalar_lea.hbm %s2310_s7, 64 }
  0x3c   : > { %384 = vrot.lane.b32.xlu1 %v1716_v1, %s1562_s12  ;;  %382 = vrot.lane.b32.xlu0 %v1710_v0, %s1562_s12 }
  0x3d   : > { %364 = vrot.lane.b32.xlu2 %v1710_v0, %s1563_s8 }
  0x44   : > { %348 = vrot.lane.b32.xlu1 %v1710_v0, %s1564_s9  ;;  %366 = vrot.lane.b32.xlu0 %v1716_v1, %s1563_s8 }
  0x45   : > { %350 = vrot.lane.b32.xlu2 %v1716_v1, %s1564_s9  ;;  %s1207_s9 = scalar_lea.hbm %s2310_s7, %s1366_s23 }
  0x4c   : > { %334 = vrot.lane.b32.xlu1 %v1716_v1, %s1565_s16  ;;  %332 = vrot.lane.b32.xlu0 %v1710_v0, %s1565_s16 }
  0x4d   : > { %314 = vrot.lane.b32.xlu2 %v1710_v0, %s1566_s17 }
  0x54   : > { %316 = vrot.lane.b32.xlu0 %v1716_v1, %s1566_s17  ;;  %482 = vperm.xlu1 %1445, %v472_v37   ;;  %v2311_v37 = vmov 0.0   ;;  %s1210_s17 = sshll.u32 %s1207_s9, 4  ;;  %s1211_s17 = int_to_ptr.hbm [resolvable:$true] %s1210_s17 }
  0x55   : > { %487 = vperm.xlu2 %1446, %v473_v3   ;;  %v879_v3 = vmul.f32 1.25, %v1340_v42  ;;  %s1505_s18 = sshra.s32 %s1211_s17, 4  ;;  %s1506_s18 = int_to_ptr.hbm [resolvable:$true] %s1505_s18 }
  0x56   : > { %s1507_s19 = scalar_lea.hbm %s1506_s18, 32  ;;  %p1512_p0 = scmp.lt.s32.totalorder %s1506_s18, %s2310_s7 }
  0x57   : > { %p1508_p6 = scmp.ne.s32.totalorder %s1506_s18, %s1507_s19  ;;  %p1513_p1 = scmp.lt.s32.totalorder %s1511_s21, %s1507_s19 }
  0x59   : > { %p1509_p9 = pnand %p1508_p6, %p1663_p11  ;;  %p1514_p3 = por %p1513_p1, %p1512_p0 }
  0x5b   : > { %p1510_p13 = pneg %p1509_p9 }
  0x5c   : > { %497 = vperm.xlu1 %1445, %v475_v52  }
  0x5d   : > { %p1515_p4 = pnand %p1514_p3, %p1510_p13 }
  0x64   : > { %507 = vperm.xlu1 %1445, %v477_v7  }
  0x87   : > { %v399_v2 = vpop.permute.xlu2 %398 }
  0x8f   : > { %v401_v8 = vpop.permute.xlu2 %400 }
  0x90   : > { %v403_v24 = vsel %vm402_vm2, %v399_v2, %v401_v8  ;;  %v404_v27 = vsel %vm402_vm2, %v401_v8, %v399_v2  ;;  %v474_v2 = vld [vmem:[%s2306_s3 + $0x10] sm:$0xff]  ;;  %vm676_vm2 = vcmp.ge.f32.partialorder %v1716_v1, -0.6 }
  0x91   : > { %v410_v31 = vmul.f32 %v406_v23, %v403_v24  ;;  %v411_v34 = vmul.f32 %v407_v25, %v404_v27  ;;  %492 = vperm.xlu0 %1447, %v474_v2   ;;  %v446_v23 = vld [vmem:[%s2305_s2] sm:$0xff]  ;;  %v447_v27 = vld [vmem:[%s2305_s2 + $0x8] sm:$0xff] }
  0x92   : > { %v450_v24 = vld [vmem:[%s2305_s2 + $0x20] sm:$0xff] }
  0x93   : > { %v1120_v25 = vld [vmem:[%s2309_s6] sm:$0xff] }
  0x97   : > { %v365_v29 = vpop.permute.xlu2 %364 }
  0x9e   : > { %v415_v4 = vpop.permute.xlu1 %414  ;;  %v431_v5 = vpop.permute.xlu0 %430 }
  0x9f   : > { %v351_v47 = vpop.permute.xlu2 %350 }
  0xa6   : > { %v417_v13 = vpop.permute.xlu1 %416  ;;  %v433_v14 = vpop.permute.xlu0 %432 }
  0xa7   : > { %v419_v16 = vsel %vm418_vm0, %v415_v4, %v417_v13  ;;  %v435_v17 = vsel %vm434_vm1, %v431_v5, %v433_v14  ;;  %v436_v18 = vsel %vm434_vm1, %v433_v14, %v431_v5  ;;  %v420_v20 = vsel %vm418_vm0, %v417_v13, %v415_v4  ;;  %v315_v13 = vpop.permute.xlu2 %314 }
  0xa8   : > { %v442_v21 = vmul.f32 %v438_v10, %v435_v17  ;;  %v443_v22 = vmul.f32 %v439_v11, %v436_v18  ;;  %v426_v28 = vmul.f32 %v422_v15, %v419_v16  ;;  %v427_v30 = vmul.f32 %v423_v19, %v420_v20  ;;  %v479_v16 = vld [vmem:[%s2306_s3 + $0x38] sm:$0xff]  ;;  %v476_v17 = vld [vmem:[%s2306_s3 + $0x20] sm:$0xff] }
  0xa9   : > { %v324_v14 = vperm.slane %v297_v12, 0  ;;  %v325_v15 = vperm.slane %v297_v12, 1  ;;  %v1107_v19 = vld [vmem:[%s2307_s4] sm:$0xff]  ;;  %517 = vperm.xlu0 %1447, %v479_v16   ;;  %502 = vperm.xlu2 %1446, %v476_v17   ;;  %vm660_vm0 = vcmp.ge.f32.partialorder %v1716_v1, -1.4  ;;  %vm668_vm1 = vcmp.ge.f32.partialorder %v1716_v1, -1.0 }
  0xaa   : > { %552 = vmatpush.msra.mxu0 %v442_v21  ;;  %1367 = vmatpush.msra.mxu2 %v442_v21  ;;  %v1881_v12 = vadd.f32 2.2, %v1716_v1 }
  0xab   : > { %593 = vmatpush.msra.mxu1 %v443_v22  ;;  %1376 = vmatpush.msra.mxu3 %v443_v22 }
  0xac   : > { %553 = vmatpush.msra.mxu0 %v426_v28  ;;  %1368 = vmatpush.msra.mxu2 %v426_v28  ;;  %v451_v28 = vld [vmem:[%s2305_s2 + $0x28] sm:$0xff] }
  0xad   : > { %594 = vmatpush.msra.mxu1 %v427_v30  ;;  %1377 = vmatpush.msra.mxu3 %v427_v30  ;;  %v1568_v30 = vmov 1  }
  0xae   : > { %v385_v35 = vpop.permute.xlu1 %384  ;;  %v383_v36 = vpop.permute.xlu0 %382  ;;  %554 = vmatpush.msra.mxu0 %v410_v31  ;;  %1369 = vmatpush.msra.mxu2 %v410_v31  ;;  %v1569_v31 = vmov 3  }
  0xaf   : > { %v387_v38 = vsel %vm386_vm3, %v383_v36, %v385_v35  ;;  %v388_v39 = vsel %vm386_vm3, %v385_v35, %v383_v36  ;;  %595 = vmatpush.msra.mxu1 %v411_v34  ;;  %1378 = vmatpush.msra.mxu3 %v411_v34  ;;  %v1570_v34 = vmov 2   ;;  %v449_v35 = vld [vmem:[%s2305_s2 + $0x18] sm:$0xff]  ;;  %vm683_vm3 = vcmp.ge.f32.partialorder %v1710_v0, -0.2 }
  0xb0   : > { %v394_v40 = vmul.f32 %v390_v32, %v387_v38  ;;  %v395_v41 = vmul.f32 %v391_v33, %v388_v39  ;;  %1112 = vperm.xlu1 %1445, %v1107_v19   ;;  %v448_v32 = vld [vmem:[%s2305_s2 + $0x10] sm:$0xff]  ;;  %v453_v36 = vld [vmem:[%s2305_s2 + $0x38] sm:$0xff]  ;;  %v1316_v38 = vsel %vm645_vm9, 1.0, %v2311_v37  ;;  %v1318_v39 = vsel %vm651_vm10, 1.0, %v2311_v37 }
  0xb1   : > { %1132 = vperm.xlu0 %1447, %v1120_v25   ;;  %512 = vperm.xlu2 %1446, %v478_v26   ;;  %v452_v33 = vld [vmem:[%s2305_s2 + $0x30] sm:$0xff]  ;;  %v657_v43 = vsub.f32 %v1316_v38, %v1318_v39  ;;  %v1321_v19 = vsel %vm660_vm0, 1.0, %v2311_v37  ;;  %v742_v25 = vmul.f32 2.5, %v1881_v12  ;;  %vm700_vm9 = vcmp.ge.f32.partialorder %v1716_v1, 0.6 }
  0xb2   : > { %555 = vmatpush.msra.mxu0 %v394_v40  ;;  %1370 = vmatpush.msra.mxu2 %v394_v40  ;;  %v1322_v40 = vsel %vm667_vm11, 1.0, %v2311_v37  ;;  %vm708_vm10 = vcmp.ge.f32.partialorder %v1716_v1, 1.0  ;;  %vm715_vm11 = vcmp.ge.f32.partialorder %v1710_v0, 1.4 }
  0xb3   : > { %596 = vmatpush.msra.mxu1 %v395_v41  ;;  %1379 = vmatpush.msra.mxu3 %v395_v41  ;;  %v1320_v41 = vsel %vm659_vm12, 1.0, %v2311_v37  ;;  %vm716_vm12 = vcmp.ge.f32.partialorder %v1716_v1, 1.4 }
  0xb4   : > { %556 = vmatpush.msra.mxu0 %v1710_v0  ;;  %1371 = vmatpush.msra.mxu2 %v1710_v0  ;;  %v665_v44 = vsub.f32 %v1318_v39, %v1320_v41  ;;  %v1326_v39 = vsel %vm683_vm3, 1.0, %v2311_v37 }
  0xb5   : > { %597 = vmatpush.msra.mxu1 %v1716_v1  ;;  %1380 = vmatpush.msra.mxu3 %v1716_v1 }
  0xb6   : > { %v349_v50 = vpop.permute.xlu1 %348  ;;  %v367_v51 = vpop.permute.xlu0 %366 }
  0xb7   : > { %v369_v53 = vsel %vm368_vm4, %v365_v29, %v367_v51  ;;  %v370_v54 = vsel %vm368_vm4, %v367_v51, %v365_v29  ;;  %v353_v55 = vsel %vm352_vm5, %v349_v50, %v351_v47  ;;  %v354_v56 = vsel %vm352_vm5, %v351_v47, %v349_v50  ;;  %v1119_v29 = vld [vmem:[%s2308_s5] sm:$0xff] }
  0xb8   : > { %v376_v57 = vmul.f32 %v372_v45, %v370_v54  ;;  %v377_v58 = vmul.f32 %v373_v46, %v369_v53  ;;  %v360_v59 = vmul.f32 %v356_v48, %v354_v56  ;;  %v361_v60 = vmul.f32 %v357_v49, %v353_v55  ;;  %1448 = vset.pattern.permute.xlu1 %v1568_v30 }
  0xb9   : > { %1138 = vperm.xlu1 %1448, %v1119_v29   ;;  %1123 = vperm.xlu2 %1446, %v1119_v29   ;;  %v1855_v45 = vsel %vm675_vm13, 1.0, %v2311_v37  ;;  %v745_v46 = vsub.f32 -1.4, %v1710_v0  ;;  %v673_v47 = vsub.f32 %v1320_v41, %v1322_v40  ;;  %v741_v48 = vmul.f32 2.5, %v1340_v42 }
  0xba   : > { %557 = vmatpush.msra.mxu0 %v376_v57  ;;  %1372 = vmatpush.msra.mxu2 %v376_v57  ;;  %v1859_v49 = vadd.f32 1.8, %v1710_v0  ;;  %v759_v50 = vsub.f32 -1.0, %v1710_v0  ;;  %v1863_v51 = vsub.f32 %v1322_v40, %v1855_v45  ;;  %v1866_v53 = vadd.f32 1.4, %v1710_v0 }
  0xbb   : > { %598 = vmatpush.msra.mxu1 %v377_v58  ;;  %1381 = vmatpush.msra.mxu3 %v377_v58  ;;  %v747_v52 = vmul.f32 2.5, %v745_v46  ;;  %v773_v54 = vsub.f32 -0.6, %v1710_v0  ;;  %vm691_vm4 = vcmp.ge.f32.partialorder %v1710_v0, 0.2 }
  0xbc   : > { %558 = vmatpush.msra.mxu0 %v360_v59  ;;  %1373 = vmatpush.msra.mxu2 %v360_v59  ;;  %v755_v55 = vmul.f32 2.5, %v1859_v49  ;;  %v761_v56 = vmul.f32 2.5, %v759_v50  ;;  %v769_v57 = vmul.f32 2.5, %v1866_v53  ;;  %v743_v59 = vmul.f32 %v741_v48, %v657_v43 }
  0xbd   : > { %599 = vmatpush.msra.mxu1 %v361_v60  ;;  %1382 = vmatpush.msra.mxu3 %v361_v60  ;;  %v775_v58 = vmul.f32 2.5, %v773_v54  ;;  %v749_v60 = vmul.f32 %v747_v52, %v665_v44  ;;  %v889_v7 = vmul.f32 1.25, %v1859_v49  ;;  %vm699_vm5 = vcmp.ge.f32.partialorder %v1710_v0, 0.6 }
  0xbe   : > { %v335_v4 = vpop.permute.xlu1 %334  ;;  %v333_v5 = vpop.permute.xlu0 %332  ;;  %1450 = vset.pattern.permute.xlu0 %v1569_v31  ;;  %v757_v61 = vmul.f32 %v755_v55, %v665_v44  ;;  %v880_v43 = vmul.f32 1.25, %v1881_v12  ;;  %v1328_v44 = vsel %vm691_vm4, 1.0, %v2311_v37  ;;  %v1330_v46 = vsel %vm699_vm5, 1.0, %v2311_v37 }
  0xbf   : > { %v337_v8 = vsel %vm336_vm6, %v333_v5, %v335_v4  ;;  %v338_v9 = vsel %vm336_vm6, %v335_v4, %v333_v5  ;;  %1158 = vperm.xlu0 %1450, %v1119_v29   ;;  %v777_v2 = vmul.f32 %v775_v58, %v1863_v51  ;;  %v751_v4 = vadd.f32 %v749_v60, %v743_v59 }
  0xc0   : > { %v344_v10 = vmul.f32 %v340_v62, %v338_v9  ;;  %v345_v11 = vmul.f32 %v341_v63, %v337_v8  ;;  %v763_v62 = vmul.f32 %v761_v56, %v673_v47  ;;  %v771_v63 = vmul.f32 %v769_v57, %v673_v47 }
  0xc1   : > { %1449 = vset.pattern.permute.xlu2 %v1570_v34  ;;  %v883_v5 = vmul.f32 1.25, %v759_v50  ;;  %vm707_vm6 = vcmp.ge.f32.partialorder %v1710_v0, 1.0  ;;  %v1923_v47 = vadd.f32 0.6, %v1710_v0  ;;  %v1926_v52 = vsub.f32 %v1855_v45, %v1326_v39 }
  0xc2   : > { %559 = vmatpush.msra.mxu0 %v344_v10  ;;  %1374 = vmatpush.msra.mxu2 %v344_v10  ;;  %v765_v8 = vadd.f32 %v763_v62, %v757_v61  ;;  %v1874_v9 = vadd.f32 %v777_v2, %v771_v63  ;;  %v893_v10 = vmul.f32 1.25, %v773_v54  ;;  %v1929_v55 = vsel %vm707_vm6, 1.0, %v2311_v37 }
  0xc3   : > { %600 = vmatpush.msra.mxu1 %v345_v11  ;;  %1383 = vmatpush.msra.mxu3 %v345_v11  ;;  %v1317_v11 = vsel %vm646_vm14, 1.0, %v2311_v37  ;;  %v797_v56 = vmul.f32 2.5, %v1923_v47  ;;  %v1933_v57 = vsub.f32 0.2, %v1710_v0  ;;  %v1936_v58 = vadd.f32 0.2, %v1710_v0 }
  0xc4   : > { %1148 = vperm.xlu2 %1449, %v1119_v29   ;;  %v885_v16 = vmul.f32 %v883_v5, %v765_v8  ;;  %v891_v17 = vmul.f32 %v889_v7, %v765_v8  ;;  %v774_v29 = vsub.f32 -0.6, %v1716_v1  ;;  %v705_v61 = vsub.f32 %v1328_v44, %v1330_v46 }
  0xc5   : > { %v1939_v62 = vsub.f32 0.6, %v1710_v0  ;;  %v803_v63 = vmul.f32 2.5, %v1933_v57  ;;  %v811_v2 = vmul.f32 2.5, %v1936_v58  ;;  %v1949_v5 = vsub.f32 %v1330_v46, %v1929_v55 }
  0xc6   : > { %v317_v18 = vpop.permute.xlu0 %316  ;;  %v829_v8 = vsub.f32 1.0, %v1710_v0 }
  0xc7   : > { %v321_v20 = vsel %vm320_vm7, %v315_v13, %v317_v18  ;;  %v322_v21 = vsel %vm320_vm7, %v317_v18, %v315_v13  ;;  %v881_v13 = vmul.f32 %v879_v3, %v751_v4  ;;  %v895_v18 = vmul.f32 %v893_v10, %v1874_v9  ;;  %2324 = vst [vmem:[#allocation11_spill] sm:$0xff] %v1939_v62 }
  0xc8   : > { %v328_v6 = vmul.f32 %v324_v14, %v322_v21  ;;  %v329_v22 = vmul.f32 %v325_v15, %v321_v20  ;;  %v1319_v14 = vsel %vm652_vm15, 1.0, %v2311_v37  ;;  %v746_v15 = vsub.f32 -1.4, %v1716_v1 }
  0xc9   : > { %v1323_v20 = vsel %vm668_vm1, 1.0, %v2311_v37  ;;  %v1890_v21 = vadd.f32 1.8, %v1716_v1  ;;  %v666_v26 = vsub.f32 %v1319_v14, %v1321_v19  ;;  %v1903_v30 = vadd.f32 %v885_v16, %v881_v13 }
  0xca   : > { %560 = vmatpush.msra.mxu0 %v328_v6  ;;  %1375 = vmatpush.msra.mxu2 %v328_v6  ;;  %v760_v6 = vsub.f32 -1.0, %v1716_v1  ;;  %v1905_v31 = vadd.f32 %v895_v18, %v891_v17  ;;  %v1945_v3 = vadd.f32 -0.2, %v1710_v0  ;;  %v817_v7 = vmul.f32 2.5, %v1939_v62 }
  0xcb   : > { %601 = vmatpush.msra.mxu1 %v329_v22  ;;  %1384 = vmatpush.msra.mxu3 %v329_v22  ;;  %v1893_v22 = vmul.f32 0.8333333, %v1340_v42  ;;  %v776_v42 = vmul.f32 2.5, %v774_v29  ;;  %v890_v4 = vmul.f32 1.25, %v1890_v21  ;;  %v799_v10 = vmul.f32 %v797_v56, %v1926_v52 }
  0xcc   : > { %1300 = vmatmul.msk.f32.vlgmr.msra.gmra.mxu0 %vm520_vm8, %v446_v23  ;;  %1304 = vmatmul.msk.f32.vlgmr.msra.gmra.mxu2 %vm520_vm8, %v450_v24  ;;  %v884_v60 = vmul.f32 1.25, %v760_v6  ;;  %v894_v16 = vmul.f32 1.25, %v774_v29  ;;  %v819_v17 = vmul.f32 %v817_v7, %v705_v61  ;;  %v831_v18 = vmul.f32 2.5, %v829_v8 }
  0xcd   : > { %1308 = vmatmul.msk.f32.vlgmr.msra.gmra.mxu1 %vm520_vm8, %v446_v23  ;;  %1312 = vmatmul.msk.f32.vlgmr.msra.gmra.mxu3 %vm520_vm8, %v450_v24  ;;  %v658_v23 = vsub.f32 %v1317_v11, %v1319_v14  ;;  %v1896_v24 = vsel %vm676_vm2, 1.0, %v2311_v37  ;;  %v825_v14 = vmul.f32 2.5, %v1945_v3  ;;  %vm684_vm7 = vcmp.ge.f32.partialorder %v1716_v1, -0.2 }
  0xce   : > { %v1910_v34 = vsub.f32 %v1323_v20, %v1896_v24  ;;  %v1981_v56 = vadd.f32 0.2, %v1716_v1  ;;  %v1992_v7 = vsel %vm708_vm10, 1.0, %v2311_v37 }
  0xcf   : > { %v744_v38 = vmul.f32 %v742_v25, %v658_v23  ;;  %v827_v23 = vmul.f32 %v825_v14, %v705_v61  ;;  %v974_v25 = vmul.f32 0.8333333, %v774_v29  ;;  %v1331_v61 = vsel %vm700_vm9, 1.0, %v2311_v37 }
  0xd0   : > { %v778_v45 = vmul.f32 %v776_v42, %v1910_v34  ;;  %v2000_v14 = vsub.f32 1.0, %v1716_v1 }
  0xd4   : > { %1301 = vmatmul.msk.f32.gmra.mxu0 %vm520_vm8, %v447_v27  ;;  %1305 = vmatmul.msk.f32.gmra.mxu2 %vm520_vm8, %v451_v28 }
  0xd5   : > { %1309 = vmatmul.msk.f32.gmra.mxu1 %vm520_vm8, %v447_v27  ;;  %1313 = vmatmul.msk.f32.gmra.mxu3 %vm520_vm8, %v451_v28  ;;  %v748_v27 = vmul.f32 2.5, %v746_v15  ;;  %v1900_v28 = vadd.f32 1.4, %v1716_v1 }
  0xd7   : > { %v750_v40 = vmul.f32 %v748_v27, %v666_v26  ;;  %v770_v41 = vmul.f32 2.5, %v1900_v28  ;;  %v919_v27 = vmul.f32 1.25, %v1923_v47 }
  0xd9   : > { %v752_v15 = vadd.f32 %v750_v40, %v744_v38  ;;  %v933_v40 = vmul.f32 1.25, %v829_v8 }
  0xdb   : > { %v882_v38 = vmul.f32 %v880_v43, %v752_v15 }
  0xdc   : > { %1302 = vmatmul.msk.f32.gmra.mxu0 %vm520_vm8, %v448_v32  ;;  %1306 = vmatmul.msk.f32.gmra.mxu2 %vm520_vm8, %v452_v33 }
  0xdd   : > { %1310 = vmatmul.msk.f32.gmra.mxu1 %vm520_vm8, %v448_v32  ;;  %1314 = vmatmul.msk.f32.gmra.mxu3 %vm520_vm8, %v452_v33  ;;  %v1907_v32 = vmul.f32 0.8333333, %v773_v54  ;;  %v674_v33 = vsub.f32 %v1321_v19, %v1323_v20  ;;  %v697_v54 = vsub.f32 %v1326_v39, %v1328_v44  ;;  %v1327_v44 = vsel %vm684_vm7, 1.0, %v2311_v37 }
  0xdf   : > { %v772_v59 = vmul.f32 %v770_v41, %v674_v33  ;;  %v805_v11 = vmul.f32 %v803_v63, %v697_v54  ;;  %v813_v13 = vmul.f32 %v811_v2, %v697_v54  ;;  %v1978_v54 = vsub.f32 0.2, %v1716_v1 }
  0xe0   : > { %v1989_v2 = vsub.f32 %v1896_v24, %v1327_v44  ;;  %v812_v24 = vmul.f32 2.5, %v1981_v56 }
  0xe1   : > { %v1955_v20 = vadd.f32 %v778_v45, %v772_v59  ;;  %v1986_v45 = vsub.f32 0.6, %v1716_v1 }
  0xe3   : > { %v896_v42 = vmul.f32 %v894_v16, %v1955_v20  ;;  %2325 = vst [vmem:[#allocation12_spill] sm:$0xff] %v1986_v45 }
  0xe4   : > { %1303 = vmatmul.msk.f32.gmra.mxu0 %vm520_vm8, %v449_v35  ;;  %1307 = vmatmul.msk.f32.gmra.mxu2 %vm520_vm8, %v453_v36 }
  0xe5   : > { %1311 = vmatmul.msk.f32.gmra.mxu1 %vm520_vm8, %v449_v35  ;;  %1315 = vmatmul.msk.f32.gmra.mxu3 %vm520_vm8, %v453_v36  ;;  %v756_v35 = vmul.f32 2.5, %v1890_v21  ;;  %v762_v36 = vmul.f32 2.5, %v760_v6  ;;  %v970_v6 = vmul.f32 0.8333333, %v1881_v12  ;;  %vm692_vm8 = vcmp.ge.f32.partialorder %v1716_v1, 0.2 }
  0xe6   : > { %v929_v12 = vmul.f32 1.25, %v1936_v58  ;;  %v1329_v46 = vsel %vm692_vm8, 1.0, %v2311_v37 }
  0xe7   : > { %v758_v48 = vmul.f32 %v756_v35, %v666_v26  ;;  %v764_v50 = vmul.f32 %v762_v36, %v674_v33  ;;  %v833_v26 = vmul.f32 %v831_v18, %v1949_v5  ;;  %v923_v33 = vmul.f32 1.25, %v1939_v62 }
  0xe8   : > { %v1961_v35 = vadd.f32 %v805_v11, %v799_v10  ;;  %v821_v36 = vadd.f32 %v819_v17, %v813_v13  ;;  %v804_v11 = vmul.f32 2.5, %v1978_v54  ;;  %v1997_v13 = vadd.f32 -0.2, %v1716_v1 }
  0xe9   : > { %v766_v19 = vadd.f32 %v764_v50, %v758_v48  ;;  %v1965_v39 = vadd.f32 %v833_v26, %v827_v23  ;;  %v1974_v48 = vadd.f32 0.6, %v1716_v1  ;;  %v706_v16 = vsub.f32 %v1329_v46, %v1331_v61 }
  0xea   : > { %v921_v43 = vmul.f32 %v919_v27, %v1961_v35  ;;  %v925_v50 = vmul.f32 %v923_v33, %v821_v36  ;;  %v931_v59 = vmul.f32 %v929_v12, %v821_v36  ;;  %v818_v17 = vmul.f32 2.5, %v1986_v45 }
  0xeb   : > { %v886_v29 = vmul.f32 %v884_v60, %v766_v19  ;;  %v892_v41 = vmul.f32 %v890_v4, %v766_v19  ;;  %v935_v60 = vmul.f32 %v933_v40, %v1965_v39  ;;  %v698_v4 = vsub.f32 %v1327_v44, %v1329_v46  ;;  %v2027_v46 = vpop.permute.xlu2 %487 }
  0xec   : > { %v798_v10 = vmul.f32 2.5, %v1974_v48  ;;  %v2006_v18 = vadd.f32 %v925_v50, %v921_v43  ;;  %v1009_v23 = vmul.f32 0.8333333, %v1923_v47  ;;  %v1013_v26 = vmul.f32 0.8333333, %v829_v8 }
  0xed   : > { %v888_v63 = vadd.f32 %v886_v29, %v882_v38  ;;  %v2002_v15 = vadd.f32 %v896_v42, %v892_v41  ;;  %v2008_v19 = vadd.f32 %v935_v60, %v931_v59  ;;  %v971_v27 = vmul.f32 %v1893_v22, %v1903_v30 }
  0xee   : > { %2326 = vst [vmem:[#allocation13_spill] sm:$0xff] %v2006_v18  ;;  %v2014_v33 = vsub.f32 %v1331_v61, %v1992_v7  ;;  %v800_v36 = vmul.f32 %v798_v10, %v1989_v2  ;;  %v806_v38 = vmul.f32 %v804_v11, %v698_v4  ;;  %v826_v12 = vmul.f32 2.5, %v1997_v13 }
  0xef   : > { %v832_v40 = vmul.f32 2.5, %v2000_v14  ;;  %v975_v29 = vmul.f32 %v1907_v32, %v1905_v31  ;;  %v814_v41 = vmul.f32 %v812_v24, %v698_v4  ;;  %v820_v42 = vmul.f32 %v818_v17, %v706_v16 }
  0xf0   : > { %v2022_v47 = vadd.f32 1.0, %v1710_v0  ;;  %v972_v8 = vmul.f32 %v970_v6, %v888_v63  ;;  %v976_v22 = vmul.f32 %v974_v25, %v2002_v15  ;;  %v1011_v30 = vmul.f32 %v1009_v23, %v2006_v18 }
  0xf1   : > { %v1015_v44 = vmul.f32 %v1013_v26, %v2008_v19  ;;  %v920_v43 = vmul.f32 1.25, %v1974_v48  ;;  %v924_v50 = vmul.f32 1.25, %v1986_v45  ;;  %v787_v59 = vsub.f32 -0.2, %v1710_v0 }
  0xf2   : > { %v783_v32 = vmul.f32 2.5, %v2022_v47  ;;  %v2033_v60 = vadd.f32 %v806_v38, %v800_v36  ;;  %v828_v61 = vmul.f32 %v826_v12, %v706_v16  ;;  %v834_v6 = vmul.f32 %v832_v40, %v2014_v33  ;;  %v483_v36 = vpop.permute.xlu1 %482 }
  0xf3   : > { %v2037_v25 = vadd.f32 1.0, %v1716_v1  ;;  %v822_v4 = vadd.f32 %v820_v42, %v814_v41  ;;  %v789_v11 = vmul.f32 2.5, %v787_v59  ;;  %v788_v24 = vsub.f32 -0.2, %v1716_v1 }
  0xf4   : > { %v785_v10 = vmul.f32 %v783_v32, %v1863_v51  ;;  %v977_v17 = vadd.f32 %v975_v29, %v971_v27  ;;  %v2041_v23 = vadd.f32 %v976_v22, %v972_v8  ;;  %v899_v26 = vmul.f32 1.25, %v1866_v53 }
  0xf5   : > { %v2044_v16 = vadd.f32 %v1015_v44, %v1011_v30  ;;  %v930_v12 = vmul.f32 1.25, %v1981_v56  ;;  %v791_v40 = vmul.f32 %v789_v11, %v1926_v52  ;;  %v903_v37 = vmul.f32 1.25, %v787_v59 }
  0xf6   : > { %v2048_v42 = vadd.f32 %v834_v6, %v828_v61  ;;  %v934_v51 = vmul.f32 1.25, %v2000_v14  ;;  %v784_v27 = vmul.f32 2.5, %v2037_v25  ;;  %v922_v29 = vmul.f32 %v920_v43, %v2033_v60 }
  0xf7   : > { %v926_v8 = vmul.f32 %v924_v50, %v822_v4  ;;  %v2053_v22 = vadd.f32 %v791_v40, %v785_v10  ;;  %v790_v32 = vmul.f32 2.5, %v788_v24  ;;  %v1010_v44 = vmul.f32 0.8333333, %v1974_v48 }
  0xf8   : > { %v901_v18 = vmul.f32 %v899_v26, %v1874_v9  ;;  %v786_v52 = vmul.f32 %v784_v27, %v1910_v34  ;;  %v904_v11 = vmul.f32 1.25, %v788_v24  ;;  %v932_v43 = vmul.f32 %v930_v12, %v822_v4 }
  0xf9   : > { %v905_v61 = vmul.f32 %v903_v37, %v2053_v22  ;;  %v792_v6 = vmul.f32 %v790_v32, %v1989_v2  ;;  %v936_v50 = vmul.f32 %v934_v51, %v2048_v42  ;;  %v1014_v9 = vmul.f32 0.8333333, %v2000_v14 }
  0xfa   : > { %v979_v37 = vmul.f32 0.8333333, %v1859_v49  ;;  %v1097_v26 = vsub.f32 0.0, %v1710_v0  ;;  %v2076_v4 = vadd.f32 -0.6, %v1710_v0 }
  0xfb   : > { %v2069_v34 = vadd.f32 %v792_v6, %v786_v52  ;;  %v2078_v12 = vadd.f32 %v905_v61, %v901_v18  ;;  %v983_v40 = vmul.f32 0.8333333, %v787_v59  ;;  %v2082_v51 = vadd.f32 %v936_v50, %v932_v43 }
  0xfc   : > { %v839_v27 = vmul.f32 2.5, %v2076_v4  ;;  %v980_v18 = vmul.f32 0.8333333, %v1890_v21  ;;  %v984_v32 = vmul.f32 0.8333333, %v788_v24  ;;  %v1098_v59 = vsub.f32 0.0, %v1716_v1 }
  0xfd   : > { %v906_v14 = vmul.f32 %v904_v11, %v2069_v34  ;;  %v1099_v61 = vmul.f32 1.442695, %v1097_v26  ;;  %v2095_v11 = vpop.permute.xlu1 %497  ;;  %v985_v43 = vmul.f32 %v983_v40, %v2078_v12  ;;  %v2106_v50 = vadd.f32 -0.6, %v1716_v1 }
  0xfe   : > { %v841_v6 = vmul.f32 %v839_v27, %v1949_v5  ;;  %2329 = vst [vmem:[#allocation15_spill] sm:$0xff] %v2095_v11  ;;  %v2109_v5 = vsub.f32 1.4, %v1716_v1  ;;  %v1101_v40 = vmul.f32 1.442695, %v1098_v59  ;;  %v982_v62 = vmul.f32 %v980_v18, %v2002_v15 }
  0xff   : > { %1451 = vpow2.f32 %v1099_v61 }
 0x100   : > { %v846_v11 = vmul.f32 2.5, %v2109_v5  ;;  %1453 = vpow2.f32 %v1101_v40 }
 0x103   : > { %v503_v10 = vpop.permute.xlu2 %502 }
 0x149   : > { %v562_v63 = vpop.f32.mrf.mxu0 }
 0x14a   : > { %v603_v38 = vpop.f32.mrf.mxu1  ;;  %v563_v41 = vadd.f32 %v562_v63, %v483_v36  ;;  %v900_v63 = vmul.f32 1.25, %v1900_v28 }
 0x14b   : > { %v604_v30 = vadd.f32 %v603_v38, %v483_v36  ;;  %v2065_v36 = vadd.f32 %v926_v8, %v922_v29  ;;  %v843_v29 = vsub.f32 1.4, %v1710_v0  ;;  %v981_v8 = vmul.f32 %v979_v37, %v1905_v31 }
 0x14c   : > { %v2061_v45 = vmul.f32 %v977_v17, %v563_v41  ;;  %v2328_v17 = vmov 0.0   ;;  %v902_v41 = vmul.f32 %v900_v63, %v1955_v20  ;;  %v1016_v37 = vmul.f32 %v1014_v9, %v2082_v51 }
 0x14d   : > { %2327 = vst [vmem:[#allocation14_spill] sm:$0xff] %v2065_v36  ;;  %v2073_v38 = vsel %vm715_vm11, 1.0, %v2328_v17  ;;  %v845_v63 = vmul.f32 2.5, %v843_v29  ;;  %v943_v31 = vmul.f32 1.25, %v843_v29  ;;  %v2103_v24 = vsel %vm716_vm12, 1.0, %v2328_v17 }
 0x14e   : > { %v2086_v49 = vsub.f32 %v1929_v55, %v2073_v38  ;;  %v939_v55 = vmul.f32 1.25, %v1945_v3  ;;  %v2098_v0 = vadd.f32 %v906_v14, %v902_v41  ;;  %v2118_v27 = vsub.f32 %v1992_v7, %v2103_v24 }
 0x14f   : > { %v574_v48 = vpop.f32.mrf.mxu2  ;;  %v987_v1 = vadd.f32 %v985_v43, %v981_v8  ;;  %v1052_v9 = vmul.f32 %v2041_v23, %v604_v30  ;;  %v1019_v8 = vmul.f32 0.8333333, %v1936_v58  ;;  %v909_v23 = vmul.f32 1.25, %v2022_v47 }
 0x150   : > { %v575_v2 = vadd.f32 %v574_v48, %v503_v10  ;;  %v615_v20 = vpop.f32.mrf.mxu3  ;;  %v847_v21 = vmul.f32 %v845_v63, %v2086_v49  ;;  %v1012_v48 = vmul.f32 %v1010_v44, %v2065_v36  ;;  %v840_v63 = vmul.f32 2.5, %v2106_v50 }
 0x151   : > { %v565_v52 = vpop.f32.mrf.mxu0  ;;  %v986_v44 = vmul.f32 %v984_v32, %v2098_v0  ;;  %v616_v59 = vadd.f32 %v615_v20, %v503_v10  ;;  %v848_v18 = vmul.f32 %v846_v11, %v2118_v27  ;;  %v1023_v32 = vmul.f32 0.8333333, %v843_v29 }
 0x152   : > { %v566_v26 = vadd.f32 %v565_v52, %v2027_v46  ;;  %v606_v41 = vpop.f32.mrf.mxu1  ;;  %v2114_v14 = vadd.f32 %v847_v21, %v841_v6  ;;  %v941_v52 = vmul.f32 %v939_v55, %v1965_v39  ;;  %v2128_v7 = vmul.f32 %v2044_v16, %v575_v2  ;;  %v508_v55 = vpop.permute.xlu1 %507 }
 0x153   : > { %v1018_v21 = vadd.f32 %v1016_v37, %v1012_v48  ;;  %v607_v36 = vadd.f32 %v606_v41, %v2027_v46  ;;  %v842_v15 = vmul.f32 %v840_v63, %v2014_v33  ;;  %v988_v10 = vadd.f32 %v986_v44, %v982_v62  ;;  %v1452_v33 = vpop.eup %1451 }
 0x154   : > { %v945_v6 = vmul.f32 %v943_v31, %v2114_v14  ;;  %v1057_v30 = vmul.f32 %v987_v1, %v566_v26  ;;  %v913_v20 = vmul.f32 1.25, %v1933_v57  ;;  %v940_v46 = vmul.f32 1.25, %v1997_v13 }
 0x155   : > { %v911_v61 = vmul.f32 %v909_v23, %v2053_v22  ;;  %v989_v58 = vmul.f32 0.8333333, %v1866_v53  ;;  %v993_v43 = vmul.f32 0.8333333, %v1933_v57  ;;  %v910_v62 = vmul.f32 1.25, %v2037_v25  ;;  %v1454_v22 = vpop.eup %1453 }
 0x156   : > { %v2136_v16 = vadd.f32 %v945_v6, %v941_v52  ;;  %v915_v11 = vmul.f32 %v913_v20, %v1961_v35  ;;  %v914_v29 = vmul.f32 1.25, %v1978_v54  ;;  %v2145_v31 = vmul.f32 %v1018_v21, %v616_v59 }
 0x157   : > { %v577_v39 = vpop.f32.mrf.mxu2  ;;  %v2147_v37 = vadd.f32 %v848_v18, %v842_v15  ;;  %v944_v26 = vmul.f32 1.25, %v2109_v5  ;;  %v912_v35 = vmul.f32 %v910_v62, %v2069_v34  ;;  %v1059_v41 = vadd.f32 %v1057_v30, %v2061_v45 }
 0x158   : > { %v618_v2 = vpop.f32.mrf.mxu3  ;;  %v578_v48 = vadd.f32 %v577_v39, %v508_v55  ;;  %v2152_v40 = vadd.f32 %v915_v11, %v911_v61  ;;  %v916_v57 = vmul.f32 %v914_v29, %v2033_v60  ;;  %v1058_v63 = vmul.f32 %v988_v10, %v607_v36  ;;  %v2165_v60 = vld [vmem:[%s1703_s22] sm:$0xff] }
 0x159   : > { %v2150_v53 = vadd.f32 %v618_v2, %v508_v55  ;;  %v1103_v1 = vadd.f32 1.0, %v1452_v33  ;;  %v1021_v44 = vmul.f32 %v1019_v8, %v2008_v19  ;;  %v1025_v59 = vmul.f32 %v1023_v32, %v2136_v16  ;;  %v568_v18 = vpop.f32.mrf.mxu0  ;;  %v493_v8 = vpop.permute.xlu0 %492 }
 0x15a   : > { %v942_v52 = vmul.f32 %v940_v46, %v2048_v42  ;;  %v991_v6 = vmul.f32 %v989_v58, %v2078_v12  ;;  %v995_v21 = vmul.f32 %v993_v43, %v2152_v40  ;;  %v946_v15 = vmul.f32 %v944_v26, %v2147_v37 }
 0x15b   : > { %v990_v34 = vmul.f32 0.8333333, %v1900_v28  ;;  %vm723_vm13 = vcmp.ge.f32.partialorder %v2165_v60, 1.8  ;;  %v2169_v45 = vadd.f32 -1.0, %v2165_v60  ;;  %v918_v19 = vadd.f32 %v916_v57, %v912_v35 }
 0x15c   : > { %v994_v36 = vmul.f32 0.8333333, %v1978_v54  ;;  %v2173_v42 = vsel %vm723_vm13, 1.0, %v2328_v17  ;;  %v857_v12 = vsub.f32 1.8, %v2165_v60  ;;  %v2176_v23 = vadd.f32 %v1058_v63, %v1052_v9  ;;  %v609_v9 = vpop.f32.mrf.mxu1 }
 0x15d   : > { %v2178_v30 = vadd.f32 1.0, %v1454_v22  ;;  %v2182_v28 = vsub.f32 %v2073_v38, %v2173_v42  ;;  %v853_v10 = vmul.f32 2.5, %v2169_v45  ;;  %v1020_v39 = vmul.f32 0.8333333, %v1981_v56  ;;  %v2194_v56 = vld [vmem:[%s1703_s22 + $0x8] sm:$0xff]  ;;  %s1292_s22 = sshll.u32 %s1699_s15, 5 }
 0x15e   : > { %v569_v54 = vadd.f32 %v568_v18, %v493_v8  ;;  %v997_v32 = vadd.f32 %v995_v21, %v991_v6  ;;  %v859_v20 = vmul.f32 2.5, %v857_v12  ;;  %1455 = vrcp.f32 %v1103_v1  ;;  %s296_s29 = scalar_lea.vmem [#allocation7], %s1292_s22 }
 0x15f   : > { %v1027_v2 = vadd.f32 %v1025_v59, %v1021_v44  ;;  %v1024_v46 = vmul.f32 0.8333333, %v2109_v5  ;;  %v855_v61 = vmul.f32 %v853_v10, %v2086_v49  ;;  %v2188_v58 = vadd.f32 %v946_v15, %v942_v52  ;;  %s1208_s28 = sshll.u32 %s296_s29, 4  ;;  %s1209_s28 = int_to_ptr.vmem [resolvable:$true] %s1208_s28 }
 0x160   : > { %v992_v38 = vmul.f32 %v990_v34, %v2098_v0  ;;  %v996_v33 = vmul.f32 %v994_v36, %v918_v19  ;;  %v861_v55 = vmul.f32 %v859_v20, %v2182_v28  ;;  %v949_v11 = vmul.f32 1.25, %v2076_v4  ;;  %v2330_v36 = vld [vmem:[#allocation11_spill] sm:$0xff] }
 0x161   : > { %vm724_vm14 = vcmp.ge.f32.partialorder %v2194_v56, 1.8  ;;  %v2198_v43 = vadd.f32 -1.0, %v2194_v56  ;;  %v858_v5 = vsub.f32 1.8, %v2194_v56  ;;  %v2202_v49 = vmul.f32 %v1020_v39, %v2082_v51  ;;  %v571_v15 = vpop.f32.mrf.mxu0 }
 0x162   : > { %v1063_v62 = vmul.f32 %v997_v32, %v569_v54  ;;  %v953_v29 = vmul.f32 1.25, %v857_v12  ;;  %v2205_v0 = vsel %vm724_vm14, 1.0, %v2328_v17  ;;  %v2207_v26 = vadd.f32 %v861_v55, %v855_v61 }
 0x163   : > { %v2211_v22 = vsub.f32 %v2103_v24, %v2205_v0  ;;  %v854_v35 = vmul.f32 2.5, %v2198_v43  ;;  %v860_v57 = vmul.f32 2.5, %v858_v5  ;;  %v2214_v63 = vmul.f32 %v1027_v2, %v578_v48  ;;  %v2333_v2 = vld [vmem:[#allocation13_spill] sm:$0xff] }
 0x164   : > { %v2217_v1 = vmul.f32 %v1024_v46, %v2188_v58  ;;  %v610_v51 = vadd.f32 %v609_v9, %v493_v8  ;;  %v998_v44 = vadd.f32 %v996_v33, %v992_v38  ;;  %v2219_v59 = vpop.eup %1455  ;;  %v951_v52 = vmul.f32 %v949_v11, %v2114_v14  ;;  %v2331_v14 = vld [vmem:[#allocation12_spill] sm:$0xff]  ;;  %v2334_v9 = vld [vmem:[#allocation14_spill] sm:$0xff] }
 0x165   : > { %v1029_v6 = vmul.f32 0.8333333, %v1945_v3  ;;  %v1033_v21 = vmul.f32 0.8333333, %v857_v12  ;;  %v999_v24 = vmul.f32 0.8333333, %v2022_v47  ;;  %v1065_v18 = vadd.f32 %v1063_v62, %v1059_v41  ;;  %v612_v41 = vpop.f32.mrf.mxu1 }
 0x166   : > { %v856_v34 = vmul.f32 %v854_v35, %v2118_v27  ;;  %v862_v48 = vmul.f32 %v860_v57, %v2211_v22  ;;  %v1003_v10 = vmul.f32 0.8333333, %v2330_v36  ;;  %v955_v8 = vmul.f32 %v953_v29, %v2207_v26  ;;  %v2332_v12 = vld [vmem:[#allocation15_spill] sm:$0xff] }
 0x167   : > { %v1001_v39 = vmul.f32 %v999_v24, %v2152_v40  ;;  %v1000_v54 = vmul.f32 0.8333333, %v2037_v25  ;;  %v1004_v32 = vmul.f32 0.8333333, %v2331_v14  ;;  %v1064_v3 = vmul.f32 %v998_v44, %v610_v51  ;;  %v580_v40 = vpop.f32.mrf.mxu2 }
 0x168   : > { %v572_v20 = vadd.f32 %v571_v15, %v2332_v12  ;;  %v1005_v47 = vmul.f32 %v1003_v10, %v2333_v2  ;;  %vm731_vm15 = vcmp.ge.f32.partialorder %v2165_v60, 2.2  ;;  %v950_v27 = vmul.f32 1.25, %v2106_v50 }
 0x169   : > { %v1002_v46 = vmul.f32 %v1000_v54, %v918_v19  ;;  %v1006_v61 = vmul.f32 %v1004_v32, %v2334_v9  ;;  %v1338_v38 = vsel %vm731_vm15, 1.0, %v2328_v17  ;;  %v864_v33 = vadd.f32 %v862_v48, %v856_v34 }
 0x16a   : > { %v954_v25 = vmul.f32 1.25, %v858_v5  ;;  %v1007_v55 = vadd.f32 %v1005_v47, %v1001_v39  ;;  %v1358_v11 = vadd.f32 -1.4, %v2165_v60  ;;  %v957_v62 = vadd.f32 %v955_v8, %v951_v52 }
 0x16b   : > { %v1031_v29 = vmul.f32 %v1029_v6, %v2136_v16  ;;  %v737_v35 = vsub.f32 %v2173_v42, %v1338_v38  ;;  %v871_v57 = vsub.f32 2.2, %v2165_v60  ;;  %v613_v19 = vadd.f32 %v612_v41, %v2332_v12 }
 0x16c   : > { %v1069_v51 = vmul.f32 %v1007_v55, %v572_v20  ;;  %v1008_v44 = vadd.f32 %v1006_v61, %v1002_v46  ;;  %v867_v15 = vmul.f32 2.5, %v1358_v11  ;;  %v1066_v24 = vadd.f32 %v1064_v3, %v2176_v23  ;;  %v621_v23 = vpop.f32.mrf.mxu3 }
 0x16d   : > { %v952_v34 = vmul.f32 %v950_v27, %v2147_v37  ;;  %v873_v48 = vmul.f32 2.5, %v871_v57  ;;  %v959_v36 = vmul.f32 1.25, %v2169_v45  ;;  %v956_v10 = vmul.f32 %v954_v25, %v864_v33 }
 0x16e   : > { %v1030_v52 = vmul.f32 0.8333333, %v1997_v13  ;;  %v1071_v16 = vadd.f32 %v1069_v51, %v1065_v18  ;;  %v869_v42 = vmul.f32 %v867_v15, %v2182_v28  ;;  %v1035_v6 = vmul.f32 %v1033_v21, %v957_v62  ;;  %v513_v28 = vpop.permute.xlu2 %512 }
 0x16f   : > { %v1034_v8 = vmul.f32 0.8333333, %v858_v5  ;;  %v875_v39 = vmul.f32 %v873_v48, %v737_v35  ;;  %v963_v54 = vmul.f32 1.25, %v871_v57  ;;  %v1070_v14 = vmul.f32 %v1008_v44, %v613_v19  ;;  %v583_v9 = vpop.f32.mrf.mxu2  ;;  %v1113_v44 = vpop.permute.xlu1 %1112 }
 0x170   : > { %v1039_v32 = vmul.f32 0.8333333, %v2076_v4  ;;  %vm732_vm0 = vcmp.ge.f32.partialorder %v2194_v56, 2.2  ;;  %v1359_v37 = vadd.f32 -1.4, %v2194_v56  ;;  %v1077_v45 = vadd.f32 %v2128_v7, %v1071_v16  ;;  %v518_v4 = vpop.permute.xlu0 %517 }
 0x171   : > { %v877_v3 = vadd.f32 %v875_v39, %v869_v42  ;;  %v961_v13 = vmul.f32 %v959_v36, %v2207_v26  ;;  %v1339_v18 = vsel %vm732_vm0, 1.0, %v2328_v17  ;;  %v958_v21 = vadd.f32 %v956_v10, %v952_v34 }
 0x172   : > { %v738_v5 = vsub.f32 %v2205_v0, %v1339_v18  ;;  %v868_v12 = vmul.f32 2.5, %v1359_v37  ;;  %v872_v20 = vsub.f32 2.2, %v2194_v56  ;;  %v581_v2 = vadd.f32 %v580_v40, %v513_v28 }
 0x173   : > { %v1037_v47 = vadd.f32 %v1035_v6, %v1031_v29  ;;  %v965_v27 = vmul.f32 %v963_v54, %v877_v3  ;;  %v1043_v41 = vmul.f32 0.8333333, %v871_v57  ;;  %v1072_v46 = vadd.f32 %v1070_v14, %v1066_v24 }
 0x174   : > { %v870_v7 = vmul.f32 %v868_v12, %v2211_v22  ;;  %v874_v61 = vmul.f32 2.5, %v872_v20  ;;  %v960_v26 = vmul.f32 1.25, %v2198_v43  ;;  %v1028_v17 = vadd.f32 %v2217_v1, %v2202_v49  ;;  %v624_v36 = vpop.f32.mrf.mxu3 }
 0x175   : > { %v967_v38 = vadd.f32 %v965_v27, %v961_v13  ;;  %v1041_v0 = vmul.f32 %v1039_v32, %v957_v62  ;;  %v1083_v25 = vadd.f32 %v2214_v63, %v1077_v45  ;;  %v1032_v55 = vmul.f32 %v1030_v52, %v2188_v58 }
 0x176   : > { %v1036_v40 = vmul.f32 %v1034_v8, %v958_v21  ;;  %v876_v11 = vmul.f32 %v874_v61, %v738_v5  ;;  %v964_v29 = vmul.f32 1.25, %v872_v20  ;;  %1457 = vrcp.f32 %v2178_v30  ;;  %v1124_v10 = vpop.permute.xlu2 %1123 }
 0x177   : > { %v1087_v35 = vmul.f32 %v1037_v47, %v581_v2  ;;  %v584_v57 = vadd.f32 %v583_v9, %v518_v4  ;;  %v1045_v22 = vmul.f32 %v1043_v41, %v967_v38  ;;  %v1078_v51 = vadd.f32 %v2145_v31, %v1072_v46  ;;  %v1139_v45 = vpop.permute.xlu1 %1138 }
 0x178   : > { %v878_v43 = vadd.f32 %v876_v11, %v870_v7  ;;  %v962_v19 = vmul.f32 %v960_v26, %v864_v33  ;;  %v1040_v49 = vmul.f32 0.8333333, %v2106_v50  ;;  %v1108_v1 = vmul.f32 %v2165_v60, %v2219_v59  ;;  %v1133_v42 = vpop.permute.xlu0 %1132 }
 0x179   : > { %v1082_v63 = vmul.f32 %v1028_v17, %v2150_v53  ;;  %v1047_v58 = vadd.f32 %v1045_v22, %v1041_v0  ;;  %v1089_v62 = vadd.f32 %v1087_v35, %v1083_v25  ;;  %v622_v15 = vadd.f32 %v621_v23, %v513_v28 }
 0x17a   : > { %v1038_v24 = vadd.f32 %v1036_v40, %v1032_v55  ;;  %v966_v30 = vmul.f32 %v964_v29, %v878_v43  ;;  %v1044_v34 = vmul.f32 0.8333333, %v872_v20  ;;  %v1042_v52 = vmul.f32 %v1040_v49, %v958_v21 }
 0x17b   : > { %v1093_v48 = vmul.f32 %v1047_v58, %v584_v57  ;;  %v1084_v33 = vadd.f32 %v1082_v63, %v1078_v51  ;;  %v1115_v50 = vmul.f32 %v1113_v44, %v1108_v1  ;;  %v625_v59 = vadd.f32 %v624_v36, %v518_v4 }
 0x17c   : > { %v968_v31 = vadd.f32 %v966_v30, %v962_v19  ;;  %v1458_v16 = vpop.eup %1457  ;;  %v1088_v60 = vmul.f32 %v1038_v24, %v622_v15 }
 0x17d   : > { %v1095_v6 = vadd.f32 %v1093_v48, %v1089_v62  ;;  %v1109_v39 = vmul.f32 %v2194_v56, %v1458_v16 }
 0x17e   : > { %v1046_v53 = vmul.f32 %v1044_v34, %v968_v31  ;;  %v1090_v14 = vadd.f32 %v1088_v60, %v1084_v33  ;;  %v1149_v12 = vpop.permute.xlu2 %1148 }
 0x17f   : > { %v1117_v8 = vadd.f32 %v1115_v50, %v1095_v6  ;;  %v1116_v21 = vmul.f32 %v1113_v44, %v1109_v39 }
 0x180   : > { %v1048_v54 = vadd.f32 %v1046_v53, %v1042_v52  ;;  %v1159_v27 = vpop.permute.xlu0 %1158 }
 0x181   : > { %v1126_v32 = vperm.slane %v1117_v8, 0  ;;  %v1141_v37 = vperm.slane %v1117_v8, 1  ;;  %v1167_v3 = vperm.slane %v1117_v8, 4  ;;  %v1151_v13 = vperm.slane %v1117_v8, 2 }
 0x182   : > { %v1094_v23 = vmul.f32 %v1048_v54, %v625_v59  ;;  %v1173_v28 = vperm.slane %v1117_v8, 5  ;;  %v1161_v4 = vperm.slane %v1117_v8, 3  ;;  %v1179_v41 = vperm.slane %v1117_v8, 6 }
 0x183   : > { %v1128_v18 = vmul.f32 %v1126_v32, %v1124_v10  ;;  %v1169_v20 = vmul.f32 %v1167_v3, %v1124_v10  ;;  %v1143_v47 = vmul.f32 %v1141_v37, %v1139_v45  ;;  %v1153_v9 = vmul.f32 %v1151_v13, %v1149_v12 }
 0x184   : > { %v1096_v5 = vadd.f32 %v1094_v23, %v1090_v14  ;;  %v1175_v61 = vmul.f32 %v1173_v28, %v1139_v45  ;;  %v1185_v26 = vperm.slane %v1117_v8, 7  ;;  %v1163_v0 = vmul.f32 %v1161_v4, %v1159_v27 }
 0x185   : > { %v1135_v2 = vadd.f32 %v1133_v42, %v1128_v18  ;;  %v1171_v46 = vadd.f32 %v1169_v20, %v1133_v42  ;;  %v1181_v35 = vmul.f32 %v1179_v41, %v1149_v12 }
 0x186   : > { %v1118_v56 = vadd.f32 %v1116_v21, %v1096_v5  ;;  %v1187_v19 = vmul.f32 %v1185_v26, %v1159_v27 }
 0x187   : > { %v1145_v7 = vadd.f32 %v1143_v47, %v1135_v2  ;;  %v1177_v40 = vadd.f32 %v1175_v61, %v1171_v46 }
 0x188   : > { %v1127_v17 = vperm.slane %v1118_v56, 0  ;;  %v1142_v38 = vperm.slane %v1118_v56, 1  ;;  %v1168_v25 = vperm.slane %v1118_v56, 4  ;;  %v1174_v55 = vperm.slane %v1118_v56, 5 }
 0x189   : > { %v1155_v11 = vadd.f32 %v1153_v9, %v1145_v7  ;;  %v1152_v29 = vperm.slane %v1118_v56, 2  ;;  %v1180_v22 = vperm.slane %v1118_v56, 6  ;;  %v1162_v63 = vperm.slane %v1118_v56, 3 }
 0x18a   : > { %v1129_v57 = vmul.f32 %v1127_v17, %v1124_v10  ;;  %v1170_v51 = vmul.f32 %v1168_v25, %v1124_v10  ;;  %v1144_v1 = vmul.f32 %v1142_v38, %v1139_v45  ;;  %v1183_v58 = vadd.f32 %v1181_v35, %v1177_v40 }
 0x18b   : > { %v1165_v43 = vadd.f32 %v1163_v0, %v1155_v11  ;;  %v1176_v44 = vmul.f32 %v1174_v55, %v1139_v45  ;;  %v1186_v15 = vperm.slane %v1118_v56, 7  ;;  %v1154_v24 = vmul.f32 %v1152_v29, %v1149_v12 }
 0x18c   : > { %v1136_v49 = vadd.f32 %v1133_v42, %v1129_v57  ;;  %v1172_v62 = vadd.f32 %v1170_v51, %v1133_v42  ;;  %v1189_v34 = vadd.f32 %v1187_v19, %v1183_v58  ;;  %v1182_v48 = vmul.f32 %v1180_v22, %v1149_v12 }
 0x18d   : > { %1191 = vst [vmem:[%s296_s29] sm:$0xff] %v1165_v43  ;;  %v1164_v31 = vmul.f32 %v1162_v63, %v1159_v27  ;;  %v1188_v33 = vmul.f32 %v1186_v15, %v1159_v27 }
 0x18e   : > { %v1146_v30 = vadd.f32 %v1144_v1, %v1136_v49  ;;  %v1178_v36 = vadd.f32 %v1176_v44, %v1172_v62  ;;  %1193 = vst [vmem:[%s296_s29 + $0x10] sm:$0xff] %v1189_v34 }
 0x190   : > { %v1156_v10 = vadd.f32 %v1154_v24, %v1146_v30  ;;  %v1184_v52 = vadd.f32 %v1182_v48, %v1178_v36 }
 0x192   : > { %v1166_v16 = vadd.f32 %v1164_v31, %v1156_v10  ;;  %v1190_v50 = vadd.f32 %v1188_v33, %v1184_v52 }
 0x194   : > { %1192 = vst [vmem:[%s296_s29 + $0x8] sm:$0xff] %v1166_v16 }
 0x195   : > { %1194 = vst [vmem:[%s296_s29 + $0x18] sm:$0xff] %v1190_v50 }
 0x196   : > { %1518 = shalt.err (!%p1515_p4)
}
 0x197   : > { %s1572_s15 = smov 256  }
 0x198   : > { %1387 = dma.vmem_to_hbm [thread:$0]  (%p1663_p11), %s1209_s28, 512, %s1211_s17, %s1196_s11, %s1572_s15, %s1572_s15, %s1565_s16  }
 0x199 PF: > { %s1225_s29 = sand.u32 1, %s1545_s24   ;;  %p2335_p7 = scmp.ge.s32.totalorder %s1557_s27, 2 }
 0x19a   : > { %s1226_s12 = scalar_lea.sflag [#allocation6], %s1225_s29 }
 0x19b   : > { %p1394_p5 = pnand %p2335_p7, %p1667_p12 }
 0x19d   : > { %p1395_p8 = pneg %p1394_p5 }
 0x19f   : > { %1540 = dma.done.wait (%p1395_p8), %s1226_s12, 512  }
 0x1a0   : > { %1542 = vsyncadd (%p1395_p8), %s1226_s12, 4294966784  ;;  %s2336_s8 = sld [smem:[#allocation10_spill]]  ;;  %p20_p10 = scmp.ge.s32.totalorder %s1638_s30, 4  }
 0x1a1   : > { %s2337_s24 = smov %s1549_s25  ;;  %s2338_s25 = smov %s1553_s26 }
 0x1a2   : > { %s2340_s27 = smov %s1638_s30  ;;  %22 = sbr.rel (!%p20_p10) target bundleno = 5 (0x5), region = 100 }
 0x1a6   : > { %s2339_s26 = smov %s2336_s8 }
 0x1a7   :  { %1232 = vsyncpa [#allocation5], 1 }
 0x1a8   :  { %1234 = vsyncpa [#allocation5 + $0x1], 1 }
 0x1a9   :  { %1235 = vsyncpa [#allocation6], 1 }
 0x1aa   :  { %1237 = vsyncpa [#allocation6 + $0x1], 1 }

</bundles_post_ra>
